<compile_context>
chip_gen: v5e
topology: v5e:2x2
jax: 0.10.0
libtpu: 0.0.40
codegen_flags: <defaults>
</compile_context>

<pallas_src>
import functools
import math

import jax
import jax.numpy as jnp
from jax.experimental import pallas as pl
from jax.experimental.pallas import tpu as pltpu

VMEM_SPEC = pl.BlockSpec(memory_space=pltpu.MemorySpace.VMEM)

# ---------------------- shared packing-layout constants --------------------- #
SEG = 128                       # lane-aligned segment width
# vec slab rows (f32, width 3*SEG):
ROW_EMB_G, ROW_EMB_B, ROW_R1_B, ROW_R2_B = 0, 1, 2, 3
ROW_L0, RPL = 4, 8              # per-layer rows: qkv_b, o_b, aln_g, aln_b, fi_b, fo_b, fln_g, fln_b
# layer-weight slab column segments (bf16, width 6*SEG):
QKV_COL, OW_COL, FI_COL, FO_COL = 0, 3 * SEG, 4 * SEG, 5 * SEG


# ------------------------------ fused kernel ------------------------------- #

def _fused_forward_kernel(num_layers, num_heads, batch, seq, hidden, ffn, eps,
                          x_ref, mask_ref, vec_ref, w_ref, hw_ref, out_ref):
    H, F = hidden, ffn
    Dh = H // num_heads

    def layernorm(t, g_row, b_row):
        g = vec_ref[g_row:g_row + 1, 0:H]
        b = vec_ref[b_row:b_row + 1, 0:H]
        mu = jnp.mean(t, axis=-1, keepdims=True)
        var = jnp.mean(jnp.square(t - mu), axis=-1, keepdims=True)
        return (t - mu) * jax.lax.rsqrt(var + eps) * g + b

    def mm(a, w_bf16):
        # bf16 MXU operands, f32 accumulation (full-rate on v6e/v7x, fine on v5e).
        return jnp.dot(a.astype(jnp.bfloat16), w_bf16,
                       preferred_element_type=jnp.float32)

    # Additive attention mask broadcast to score shape ONCE (hoisted out of
    # both the layer and head loops — JAX does not CSE broadcast_in_dim).
    mask = jnp.broadcast_to(mask_ref[...], (batch, seq, seq))     # (B, S, S) f32

    # Embedding LayerNorm — no residual, no zeros tensor materialized.
    x = layernorm(x_ref[...].astype(jnp.float32), ROW_EMB_G, ROW_EMB_B)

    for l in range(num_layers):                                   # static unroll
        base = ROW_L0 + l * RPL

        # ---- fused QKV projection (1/sqrt(Dh) pre-folded into Q weights),
        #      Q/K/V segments 128-lane aligned at columns 0 / 128 / 256 ----
        qkv = mm(x, w_ref[l, 0:H, QKV_COL:QKV_COL + 3 * SEG]) \
            + vec_ref[base + 0:base + 1, 0:3 * SEG]               # (B*S, 384) f32
        q = qkv[:, 0 * SEG:0 * SEG + H]
        k = qkv[:, 1 * SEG:1 * SEG + H]
        v = qkv[:, 2 * SEG:2 * SEG + H]

        # ---- attention; output projection accumulated per head (no lane concat) ----
        acc = jnp.zeros((batch * seq, H), jnp.float32)
        for h in range(num_heads):
            sl = slice(h * Dh, (h + 1) * Dh)
            qh = q[:, sl].reshape(batch, seq, Dh)
            kh = k[:, sl].reshape(batch, seq, Dh)
            vh = v[:, sl].reshape(batch, seq, Dh)
            s = jnp.einsum("bqd,bkd->bqk",
                           qh.astype(jnp.bfloat16), kh.astype(jnp.bfloat16),
                           preferred_element_type=jnp.float32) + mask
            s = s - jnp.max(s, axis=-1, keepdims=True)
            p = jnp.exp(s)
            p = p * pl.reciprocal(jnp.sum(p, axis=-1, keepdims=True), approx=True)
            ch = jnp.einsum("bqk,bkd->bqd",
                            p.astype(jnp.bfloat16), vh.astype(jnp.bfloat16),
                            preferred_element_type=jnp.float32)
            acc = acc + mm(ch.reshape(batch * seq, Dh),
                           w_ref[l, h * Dh:(h + 1) * Dh, OW_COL:OW_COL + H])

        attn_out = acc + vec_ref[base + 1:base + 2, 0:H]
        x = layernorm(attn_out + x, base + 2, base + 3)

        # ---- feed-forward + Add&LayerNorm ----
        # TODO(synk): HF RoBERTa uses erf-GELU; tanh-approximate GELU kept for
        # robust Mosaic lowering on all TPU generations (tiny numeric delta).
        f_h = mm(x, w_ref[l, 0:H, FI_COL:FI_COL + F]) + vec_ref[base + 4:base + 5, 0:F]
        f_h = jax.nn.gelu(f_h, approximate=True)
        f_o = mm(f_h, w_ref[l, 0:F, FO_COL:FO_COL + H]) + vec_ref[base + 5:base + 6, 0:H]
        x = layernorm(f_o + x, base + 6, base + 7)

    # ---- regression head: Dropout(identity at eval) -> Linear -> SiLU -> Linear ----
    # Run on all B*S rows (same MXU latency here) so the store is fully dense
    # (16 sublanes x 128 lanes, unmasked); CLS rows are sliced on the host.
    h1 = mm(x, hw_ref[:, 0:H]) + vec_ref[ROW_R1_B:ROW_R1_B + 1, 0:H]
    h1 = h1 * jax.nn.sigmoid(h1)                                  # SiLU
    out = mm(h1, hw_ref[:, SEG:2 * SEG]) + vec_ref[ROW_R2_B:ROW_R2_B + 1, 0:SEG]
    out_ref[...] = out.astype(out_ref.dtype)


# ----------------------------- model definition ---------------------------- #

class Config:
    vocab_size = 64
    hidden = 32
    heads = 2
    layers = 2
    ffn = 64
    max_pos = 16


def init_params(key, cfg):
    def nrm(k, shape):
        return 0.02 * jax.random.normal(k, shape, dtype=jnp.float32)

    keys = iter(jax.random.split(key, 64))
    params = {
        "word_emb": nrm(next(keys), (cfg.vocab_size, cfg.hidden)),
        "pos_emb": nrm(next(keys), (cfg.max_pos, cfg.hidden)),
        "type_emb": nrm(next(keys), (1, cfg.hidden)),
        "emb_ln_g": jnp.ones((cfg.hidden,), jnp.float32),
        "emb_ln_b": jnp.zeros((cfg.hidden,), jnp.float32),
        "layers": [],
    }
    for _ in range(cfg.layers):
        lyr = {
            "q_w": nrm(next(keys), (cfg.hidden, cfg.hidden)),
            "q_b": jnp.zeros((cfg.hidden,), jnp.float32),
            "k_w": nrm(next(keys), (cfg.hidden, cfg.hidden)),
            "k_b": jnp.zeros((cfg.hidden,), jnp.float32),
            "v_w": nrm(next(keys), (cfg.hidden, cfg.hidden)),
            "v_b": jnp.zeros((cfg.hidden,), jnp.float32),
            "o_w": nrm(next(keys), (cfg.hidden, cfg.hidden)),
            "o_b": jnp.zeros((cfg.hidden,), jnp.float32),
            "attn_ln_g": jnp.ones((cfg.hidden,), jnp.float32),
            "attn_ln_b": jnp.zeros((cfg.hidden,), jnp.float32),
            "fi_w": nrm(next(keys), (cfg.hidden, cfg.ffn)),
            "fi_b": jnp.zeros((cfg.ffn,), jnp.float32),
            "fo_w": nrm(next(keys), (cfg.ffn, cfg.hidden)),
            "fo_b": jnp.zeros((cfg.hidden,), jnp.float32),
            "ffn_ln_g": jnp.ones((cfg.hidden,), jnp.float32),
            "ffn_ln_b": jnp.zeros((cfg.hidden,), jnp.float32),
        }
        params["layers"].append(lyr)
    params["r1_w"] = nrm(next(keys), (cfg.hidden, cfg.hidden))
    params["r1_b"] = jnp.zeros((cfg.hidden,), jnp.float32)
    params["r2_w"] = nrm(next(keys), (cfg.hidden, 1))
    params["r2_b"] = jnp.zeros((1,), jnp.float32)
    return params


def downstream_regression(params, input_ids, attention_mask, cfg):
    B, S = input_ids.shape
    H, Hn, L, F = cfg.hidden, cfg.heads, cfg.layers, cfg.ffn
    Dh = H // Hn
    scale = 1.0 / math.sqrt(Dh)

    # --- embeddings (token/position gathers are plain-JAX glue) ---
    # TODO(synk): real RoBERTa uses padding-offset position ids; arange(S) used here.
    x = (params["word_emb"][input_ids]
         + params["pos_emb"][jnp.arange(S)][None, :, :]
         + params["type_emb"][0][None, None, :])
    x = x.reshape(B * S, H).astype(jnp.float32)

    # --- extended additive attention mask, (B, 1, S) ---
    mask = ((1.0 - attention_mask.astype(jnp.float32)) * -1e9).reshape(B, 1, S)

    # --- vec slab: every bias / LayerNorm gamma/beta in ONE f32 array --------
    vec = jnp.zeros((ROW_L0 + RPL * L, 3 * SEG), jnp.float32)
    vec = vec.at[ROW_EMB_G, :H].set(params["emb_ln_g"])
    vec = vec.at[ROW_EMB_B, :H].set(params["emb_ln_b"])
    vec = vec.at[ROW_R1_B, :H].set(params["r1_b"])
    vec = vec.at[ROW_R2_B, 0].set(params["r2_b"][0])
    for l, lyr in enumerate(params["layers"]):
        r = ROW_L0 + l * RPL
        vec = vec.at[r + 0, 0 * SEG:0 * SEG + H].set(lyr["q_b"] * scale)  # Q scale folded
        vec = vec.at[r + 0, 1 * SEG:1 * SEG + H].set(lyr["k_b"])
        vec = vec.at[r + 0, 2 * SEG:2 * SEG + H].set(lyr["v_b"])
        vec = vec.at[r + 1, :H].set(lyr["o_b"])
        vec = vec.at[r + 2, :H].set(lyr["attn_ln_g"])
        vec = vec.at[r + 3, :H].set(lyr["attn_ln_b"])
        vec = vec.at[r + 4, :F].set(lyr["fi_b"])
        vec = vec.at[r + 5, :H].set(lyr["fo_b"])
        vec = vec.at[r + 6, :H].set(lyr["ffn_ln_g"])
        vec = vec.at[r + 7, :H].set(lyr["ffn_ln_b"])

    # --- layer-weight slab: ONE bf16 array, 128-lane-aligned column segments --
    W_ROWS = max(H, F)
    wts = jnp.zeros((L, W_ROWS, 6 * SEG), jnp.float32)
    for l, lyr in enumerate(params["layers"]):
        wts = wts.at[l, :H, QKV_COL + 0 * SEG:QKV_COL + 0 * SEG + H].set(lyr["q_w"] * scale)
        wts = wts.at[l, :H, QKV_COL + 1 * SEG:QKV_COL + 1 * SEG + H].set(lyr["k_w"])
        wts = wts.at[l, :H, QKV_COL + 2 * SEG:QKV_COL + 2 * SEG + H].set(lyr["v_w"])
        wts = wts.at[l, :H, OW_COL:OW_COL + H].set(lyr["o_w"])
        wts = wts.at[l, :H, FI_COL:FI_COL + F].set(lyr["fi_w"])
        wts = wts.at[l, :F, FO_COL:FO_COL + H].set(lyr["fo_w"])
    wts = wts.astype(jnp.bfloat16)

    # --- regression-head slab: r1_w at cols 0:H, r2_w padded to 128 lanes ----
    hw = jnp.zeros((H, 2 * SEG), jnp.float32)
    hw = hw.at[:, :H].set(params["r1_w"])
    hw = hw.at[:, SEG:SEG + 1].set(params["r2_w"])
    hw = hw.astype(jnp.bfloat16)

    kernel = functools.partial(_fused_forward_kernel, L, Hn, B, S, H, F, 1e-5)

    out = pl.pallas_call(
        kernel,
        out_shape=jax.ShapeDtypeStruct((B * S, SEG), jnp.float32),
        in_specs=[VMEM_SPEC] * 5,
        out_specs=VMEM_SPEC,
    )(x, mask, vec, wts, hw)

    # TODO(synk): nn.Dropout layers are identity in eval mode; training-mode dropout
    # (hidden/attention/regressor) is not implemented.
    return out.reshape(B, S, SEG)[:, 0, :1]                       # (B, 1) = CLS rows


# ---------------------------------- main ----------------------------------- #

if __name__ == "__main__":
    cfg = Config()
    key = jax.random.PRNGKey(0)
    k_param, k_ids = jax.random.split(key)

    params = init_params(k_param, cfg)

    B, S = 2, 8
    input_ids = jax.random.randint(k_ids, (B, S), 0, cfg.vocab_size, dtype=jnp.int32)
    attention_mask = jnp.array(
        [[1, 1, 1, 1, 1, 1, 1, 1],
         [1, 1, 1, 1, 1, 1, 0, 0]], dtype=jnp.int32)

    out = downstream_regression(params, input_ids, attention_mask, cfg)
    out = jax.block_until_ready(out)
    assert out.shape == (B, 1), out.shape
    print("KERNEL_OK")
</pallas_src>

<mosaic_0001>
module attributes {stable_mosaic.version = 11 : i64} {
  func.func @_fused_forward_kernel(%arg0: memref<16x32xf32, #tpu.memory_space<vmem>>, %arg1: memref<2x1x8xf32, #tpu.memory_space<vmem>>, %arg2: memref<20x384xf32, #tpu.memory_space<vmem>>, %arg3: memref<2x64x768xbf16, #tpu.memory_space<vmem>>, %arg4: memref<32x256xbf16, #tpu.memory_space<vmem>>, %arg5: memref<16x128xf32, #tpu.memory_space<vmem>>) attributes {dimension_semantics = [], scalar_prefetch = 0 : i64, scratch_operands = 0 : i64, tpu.core_type = #tpu.core_type<tc>} {
    %c0 = arith.constant 0 : index
    %c0_0 = arith.constant 0 : index
    %c0_1 = arith.constant 0 : index
    %0 = vector.load %arg1[%c0, %c0_0, %c0_1] : memref<2x1x8xf32, #tpu.memory_space<vmem>>, vector<2x1x8xf32>
    %1 = vector.shape_cast %0 : vector<2x1x8xf32> to vector<2x1x8xf32>
    %2 = vector.broadcast %1 : vector<2x1x8xf32> to vector<2x8x8xf32>
    %c0_2 = arith.constant 0 : index
    %c0_3 = arith.constant 0 : index
    %3 = vector.load %arg0[%c0_2, %c0_3] : memref<16x32xf32, #tpu.memory_space<vmem>>, vector<16x32xf32>
    %c0_4 = arith.constant 0 : index
    %c0_5 = arith.constant 0 : index
    %4 = vector.load %arg2[%c0_4, %c0_5] : memref<20x384xf32, #tpu.memory_space<vmem>>, vector<1x32xf32>
    %c1 = arith.constant 1 : index
    %c0_6 = arith.constant 0 : index
    %5 = vector.load %arg2[%c1, %c0_6] : memref<20x384xf32, #tpu.memory_space<vmem>>, vector<1x32xf32>
    %cst = arith.constant dense<0.000000e+00> : vector<16xf32>
    %6 = vector.multi_reduction <add>, %3, %cst [1] : vector<16x32xf32> to vector<16xf32>
    %7 = vector.shape_cast %6 : vector<16xf32> to vector<16x1xf32>
    %cst_7 = arith.constant 3.200000e+01 : f32
    %8 = vector.broadcast %cst_7 : f32 to vector<16x1xf32>
    %9 = arith.divf %7, %8 : vector<16x1xf32>
    %10 = vector.broadcast %9 : vector<16x1xf32> to vector<16x32xf32>
    %11 = arith.subf %3, %10 : vector<16x32xf32>
    %12 = arith.mulf %11, %11 : vector<16x32xf32>
    %cst_8 = arith.constant dense<0.000000e+00> : vector<16xf32>
    %13 = vector.multi_reduction <add>, %12, %cst_8 [1] : vector<16x32xf32> to vector<16xf32>
    %14 = vector.shape_cast %13 : vector<16xf32> to vector<16x1xf32>
    %cst_9 = arith.constant 3.200000e+01 : f32
    %15 = vector.broadcast %cst_9 : f32 to vector<16x1xf32>
    %16 = arith.divf %14, %15 : vector<16x1xf32>
    %17 = vector.broadcast %9 : vector<16x1xf32> to vector<16x32xf32>
    %18 = arith.subf %3, %17 : vector<16x32xf32>
    %cst_10 = arith.constant 9.99999974E-6 : f32
    %19 = vector.broadcast %cst_10 : f32 to vector<16x1xf32>
    %20 = arith.addf %16, %19 : vector<16x1xf32>
    %21 = math.rsqrt %20 : vector<16x1xf32>
    %22 = vector.broadcast %21 : vector<16x1xf32> to vector<16x32xf32>
    %23 = arith.mulf %18, %22 : vector<16x32xf32>
    %24 = vector.broadcast %4 : vector<1x32xf32> to vector<16x32xf32>
    %25 = arith.mulf %23, %24 : vector<16x32xf32>
    %26 = vector.broadcast %5 : vector<1x32xf32> to vector<16x32xf32>
    %27 = arith.addf %25, %26 : vector<16x32xf32>
    %c0_11 = arith.constant 0 : index
    %c0_12 = arith.constant 0 : index
    %c0_13 = arith.constant 0 : index
    %28 = vector.load %arg3[%c0_11, %c0_12, %c0_13] : memref<2x64x768xbf16, #tpu.memory_space<vmem>>, vector<1x32x384xbf16>
    %29 = vector.shape_cast %28 : vector<1x32x384xbf16> to vector<32x384xbf16>
    %30 = arith.truncf %27 : vector<16x32xf32> to vector<16x32xbf16>
    %cst_14 = arith.constant dense<0.000000e+00> : vector<16x384xf32>
    %31 = tpu.matmul %30, %29, %cst_14 {dimension_numbers = #tpu.dot_dimension_numbers<[1], [0], [0], [1], [0, 0, 1, 1], [], []>} : vector<16x32xbf16>, vector<32x384xbf16>, vector<16x384xf32> -> vector<16x384xf32>
    %c4 = arith.constant 4 : index
    %c0_15 = arith.constant 0 : index
    %32 = vector.load %arg2[%c4, %c0_15] : memref<20x384xf32, #tpu.memory_space<vmem>>, vector<1x384xf32>
    %33 = vector.broadcast %32 : vector<1x384xf32> to vector<16x384xf32>
    %34 = arith.addf %31, %33 : vector<16x384xf32>
    %35 = vector.extract_strided_slice %34 {offsets = [0, 0], sizes = [16, 32], strides = [1, 1]} : vector<16x384xf32> to vector<16x32xf32>
    %36 = vector.extract_strided_slice %34 {offsets = [0, 128], sizes = [16, 32], strides = [1, 1]} : vector<16x384xf32> to vector<16x32xf32>
    %37 = vector.extract_strided_slice %34 {offsets = [0, 256], sizes = [16, 32], strides = [1, 1]} : vector<16x384xf32> to vector<16x32xf32>
    %cst_16 = arith.constant 0.000000e+00 : f32
    %38 = vector.broadcast %cst_16 : f32 to vector<16x32xf32>
    %39 = vector.extract_strided_slice %35 {offsets = [0, 0], sizes = [16, 16], strides = [1, 1]} : vector<16x32xf32> to vector<16x16xf32>
    %40 = vector.shape_cast %39 : vector<16x16xf32> to vector<2x8x16xf32>
    %41 = vector.extract_strided_slice %36 {offsets = [0, 0], sizes = [16, 16], strides = [1, 1]} : vector<16x32xf32> to vector<16x16xf32>
    %42 = vector.shape_cast %41 : vector<16x16xf32> to vector<2x8x16xf32>
    %43 = vector.extract_strided_slice %37 {offsets = [0, 0], sizes = [16, 16], strides = [1, 1]} : vector<16x32xf32> to vector<16x16xf32>
    %44 = vector.shape_cast %43 : vector<16x16xf32> to vector<2x8x16xf32>
    %45 = arith.truncf %40 : vector<2x8x16xf32> to vector<2x8x16xbf16>
    %46 = arith.truncf %42 : vector<2x8x16xf32> to vector<2x8x16xbf16>
    "tpu.trace_start"() <{level = 10 : i32, message = "bqd,bkd->bqk"}> : () -> ()
    %cst_17 = arith.constant dense<0.000000e+00> : vector<2x8x8xf32>
    %47 = tpu.matmul %45, %46, %cst_17 {dimension_numbers = #tpu.dot_dimension_numbers<[2], [2], [1], [1], [0, 0, 0, 1, 1, 1], [0], [0]>} : vector<2x8x16xbf16>, vector<2x8x16xbf16>, vector<2x8x8xf32> -> vector<2x8x8xf32>
    "tpu.trace_stop"() : () -> ()
    %48 = arith.addf %47, %2 : vector<2x8x8xf32>
    %cst_18 = arith.constant dense<0xFF800000> : vector<2x8xf32>
    %49 = vector.multi_reduction <maximumf>, %48, %cst_18 [2] : vector<2x8x8xf32> to vector<2x8xf32>
    %50 = vector.shape_cast %49 : vector<2x8xf32> to vector<2x8x1xf32>
    %51 = vector.broadcast %50 : vector<2x8x1xf32> to vector<2x8x8xf32>
    %52 = arith.subf %48, %51 : vector<2x8x8xf32>
    %53 = math.exp %52 : vector<2x8x8xf32>
    %cst_19 = arith.constant dense<0.000000e+00> : vector<2x8xf32>
    %54 = vector.multi_reduction <add>, %53, %cst_19 [2] : vector<2x8x8xf32> to vector<2x8xf32>
    %55 = vector.shape_cast %54 : vector<2x8xf32> to vector<2x8x1xf32>
    %56 = tpu.reciprocal %55 {approx = true} : vector<2x8x1xf32> -> vector<2x8x1xf32>
    %57 = vector.broadcast %56 : vector<2x8x1xf32> to vector<2x8x8xf32>
    %58 = arith.mulf %53, %57 : vector<2x8x8xf32>
    %59 = arith.truncf %58 : vector<2x8x8xf32> to vector<2x8x8xbf16>
    %60 = arith.truncf %44 : vector<2x8x16xf32> to vector<2x8x16xbf16>
    "tpu.trace_start"() <{level = 10 : i32, message = "bqk,bkd->bqd"}> : () -> ()
    %cst_20 = arith.constant dense<0.000000e+00> : vector<2x8x16xf32>
    %61 = tpu.matmul %59, %60, %cst_20 {dimension_numbers = #tpu.dot_dimension_numbers<[2], [1], [1], [2], [0, 0, 0, 1, 1, 2], [0], [0]>} : vector<2x8x8xbf16>, vector<2x8x16xbf16>, vector<2x8x16xf32> -> vector<2x8x16xf32>
    "tpu.trace_stop"() : () -> ()
    %62 = vector.shape_cast %61 : vector<2x8x16xf32> to vector<16x16xf32>
    %c0_21 = arith.constant 0 : index
    %c0_22 = arith.constant 0 : index
    %c384 = arith.constant 384 : index
    %63 = vector.load %arg3[%c0_21, %c0_22, %c384] : memref<2x64x768xbf16, #tpu.memory_space<vmem>>, vector<1x16x32xbf16>
    %64 = vector.shape_cast %63 : vector<1x16x32xbf16> to vector<16x32xbf16>
    %65 = arith.truncf %62 : vector<16x16xf32> to vector<16x16xbf16>
    %cst_23 = arith.constant dense<0.000000e+00> : vector<16x32xf32>
    %66 = tpu.matmul %65, %64, %cst_23 {dimension_numbers = #tpu.dot_dimension_numbers<[1], [0], [0], [1], [0, 0, 1, 1], [], []>} : vector<16x16xbf16>, vector<16x32xbf16>, vector<16x32xf32> -> vector<16x32xf32>
    %67 = arith.addf %38, %66 : vector<16x32xf32>
    %68 = vector.extract_strided_slice %35 {offsets = [0, 16], sizes = [16, 16], strides = [1, 1]} : vector<16x32xf32> to vector<16x16xf32>
    %69 = vector.shape_cast %68 : vector<16x16xf32> to vector<2x8x16xf32>
    %70 = vector.extract_strided_slice %36 {offsets = [0, 16], sizes = [16, 16], strides = [1, 1]} : vector<16x32xf32> to vector<16x16xf32>
    %71 = vector.shape_cast %70 : vector<16x16xf32> to vector<2x8x16xf32>
    %72 = vector.extract_strided_slice %37 {offsets = [0, 16], sizes = [16, 16], strides = [1, 1]} : vector<16x32xf32> to vector<16x16xf32>
    %73 = vector.shape_cast %72 : vector<16x16xf32> to vector<2x8x16xf32>
    %74 = arith.truncf %69 : vector<2x8x16xf32> to vector<2x8x16xbf16>
    %75 = arith.truncf %71 : vector<2x8x16xf32> to vector<2x8x16xbf16>
    "tpu.trace_start"() <{level = 10 : i32, message = "bqd,bkd->bqk"}> : () -> ()
    %cst_24 = arith.constant dense<0.000000e+00> : vector<2x8x8xf32>
    %76 = tpu.matmul %74, %75, %cst_24 {dimension_numbers = #tpu.dot_dimension_numbers<[2], [2], [1], [1], [0, 0, 0, 1, 1, 1], [0], [0]>} : vector<2x8x16xbf16>, vector<2x8x16xbf16>, vector<2x8x8xf32> -> vector<2x8x8xf32>
    "tpu.trace_stop"() : () -> ()
    %77 = arith.addf %76, %2 : vector<2x8x8xf32>
    %cst_25 = arith.constant dense<0xFF800000> : vector<2x8xf32>
    %78 = vector.multi_reduction <maximumf>, %77, %cst_25 [2] : vector<2x8x8xf32> to vector<2x8xf32>
    %79 = vector.shape_cast %78 : vector<2x8xf32> to vector<2x8x1xf32>
    %80 = vector.broadcast %79 : vector<2x8x1xf32> to vector<2x8x8xf32>
    %81 = arith.subf %77, %80 : vector<2x8x8xf32>
    %82 = math.exp %81 : vector<2x8x8xf32>
    %cst_26 = arith.constant dense<0.000000e+00> : vector<2x8xf32>
    %83 = vector.multi_reduction <add>, %82, %cst_26 [2] : vector<2x8x8xf32> to vector<2x8xf32>
    %84 = vector.shape_cast %83 : vector<2x8xf32> to vector<2x8x1xf32>
    %85 = tpu.reciprocal %84 {approx = true} : vector<2x8x1xf32> -> vector<2x8x1xf32>
    %86 = vector.broadcast %85 : vector<2x8x1xf32> to vector<2x8x8xf32>
    %87 = arith.mulf %82, %86 : vector<2x8x8xf32>
    %88 = arith.truncf %87 : vector<2x8x8xf32> to vector<2x8x8xbf16>
    %89 = arith.truncf %73 : vector<2x8x16xf32> to vector<2x8x16xbf16>
    "tpu.trace_start"() <{level = 10 : i32, message = "bqk,bkd->bqd"}> : () -> ()
    %cst_27 = arith.constant dense<0.000000e+00> : vector<2x8x16xf32>
    %90 = tpu.matmul %88, %89, %cst_27 {dimension_numbers = #tpu.dot_dimension_numbers<[2], [1], [1], [2], [0, 0, 0, 1, 1, 2], [0], [0]>} : vector<2x8x8xbf16>, vector<2x8x16xbf16>, vector<2x8x16xf32> -> vector<2x8x16xf32>
    "tpu.trace_stop"() : () -> ()
    %91 = vector.shape_cast %90 : vector<2x8x16xf32> to vector<16x16xf32>
    %c0_28 = arith.constant 0 : index
    %c16 = arith.constant 16 : index
    %c384_29 = arith.constant 384 : index
    %92 = vector.load %arg3[%c0_28, %c16, %c384_29] : memref<2x64x768xbf16, #tpu.memory_space<vmem>>, vector<1x16x32xbf16>
    %93 = vector.shape_cast %92 : vector<1x16x32xbf16> to vector<16x32xbf16>
    %94 = arith.truncf %91 : vector<16x16xf32> to vector<16x16xbf16>
    %cst_30 = arith.constant dense<0.000000e+00> : vector<16x32xf32>
    %95 = tpu.matmul %94, %93, %cst_30 {dimension_numbers = #tpu.dot_dimension_numbers<[1], [0], [0], [1], [0, 0, 1, 1], [], []>} : vector<16x16xbf16>, vector<16x32xbf16>, vector<16x32xf32> -> vector<16x32xf32>
    %96 = arith.addf %67, %95 : vector<16x32xf32>
    %c5 = arith.constant 5 : index
    %c0_31 = arith.constant 0 : index
    %97 = vector.load %arg2[%c5, %c0_31] : memref<20x384xf32, #tpu.memory_space<vmem>>, vector<1x32xf32>
    %98 = vector.broadcast %97 : vector<1x32xf32> to vector<16x32xf32>
    %99 = arith.addf %96, %98 : vector<16x32xf32>
    %100 = arith.addf %99, %27 : vector<16x32xf32>
    %c6 = arith.constant 6 : index
    %c0_32 = arith.constant 0 : index
    %101 = vector.load %arg2[%c6, %c0_32] : memref<20x384xf32, #tpu.memory_space<vmem>>, vector<1x32xf32>
    %c7 = arith.constant 7 : index
    %c0_33 = arith.constant 0 : index
    %102 = vector.load %arg2[%c7, %c0_33] : memref<20x384xf32, #tpu.memory_space<vmem>>, vector<1x32xf32>
    %cst_34 = arith.constant dense<0.000000e+00> : vector<16xf32>
    %103 = vector.multi_reduction <add>, %100, %cst_34 [1] : vector<16x32xf32> to vector<16xf32>
    %104 = vector.shape_cast %103 : vector<16xf32> to vector<16x1xf32>
    %cst_35 = arith.constant 3.200000e+01 : f32
    %105 = vector.broadcast %cst_35 : f32 to vector<16x1xf32>
    %106 = arith.divf %104, %105 : vector<16x1xf32>
    %107 = vector.broadcast %106 : vector<16x1xf32> to vector<16x32xf32>
    %108 = arith.subf %100, %107 : vector<16x32xf32>
    %109 = arith.mulf %108, %108 : vector<16x32xf32>
    %cst_36 = arith.constant dense<0.000000e+00> : vector<16xf32>
    %110 = vector.multi_reduction <add>, %109, %cst_36 [1] : vector<16x32xf32> to vector<16xf32>
    %111 = vector.shape_cast %110 : vector<16xf32> to vector<16x1xf32>
    %cst_37 = arith.constant 3.200000e+01 : f32
    %112 = vector.broadcast %cst_37 : f32 to vector<16x1xf32>
    %113 = arith.divf %111, %112 : vector<16x1xf32>
    %114 = vector.broadcast %106 : vector<16x1xf32> to vector<16x32xf32>
    %115 = arith.subf %100, %114 : vector<16x32xf32>
    %cst_38 = arith.constant 9.99999974E-6 : f32
    %116 = vector.broadcast %cst_38 : f32 to vector<16x1xf32>
    %117 = arith.addf %113, %116 : vector<16x1xf32>
    %118 = math.rsqrt %117 : vector<16x1xf32>
    %119 = vector.broadcast %118 : vector<16x1xf32> to vector<16x32xf32>
    %120 = arith.mulf %115, %119 : vector<16x32xf32>
    %121 = vector.broadcast %101 : vector<1x32xf32> to vector<16x32xf32>
    %122 = arith.mulf %120, %121 : vector<16x32xf32>
    %123 = vector.broadcast %102 : vector<1x32xf32> to vector<16x32xf32>
    %124 = arith.addf %122, %123 : vector<16x32xf32>
    %c0_39 = arith.constant 0 : index
    %c0_40 = arith.constant 0 : index
    %c512 = arith.constant 512 : index
    %125 = vector.load %arg3[%c0_39, %c0_40, %c512] : memref<2x64x768xbf16, #tpu.memory_space<vmem>>, vector<1x32x64xbf16>
    %126 = vector.shape_cast %125 : vector<1x32x64xbf16> to vector<32x64xbf16>
    %127 = arith.truncf %124 : vector<16x32xf32> to vector<16x32xbf16>
    %cst_41 = arith.constant dense<0.000000e+00> : vector<16x64xf32>
    %128 = tpu.matmul %127, %126, %cst_41 {dimension_numbers = #tpu.dot_dimension_numbers<[1], [0], [0], [1], [0, 0, 1, 1], [], []>} : vector<16x32xbf16>, vector<32x64xbf16>, vector<16x64xf32> -> vector<16x64xf32>
    %c8 = arith.constant 8 : index
    %c0_42 = arith.constant 0 : index
    %129 = vector.load %arg2[%c8, %c0_42] : memref<20x384xf32, #tpu.memory_space<vmem>>, vector<1x64xf32>
    %130 = vector.broadcast %129 : vector<1x64xf32> to vector<16x64xf32>
    %131 = arith.addf %128, %130 : vector<16x64xf32>
    %132 = arith.mulf %131, %131 : vector<16x64xf32>
    %133 = arith.mulf %131, %132 : vector<16x64xf32>
    %cst_43 = arith.constant 4.471500e-02 : f32
    %134 = vector.broadcast %cst_43 : f32 to vector<16x64xf32>
    %135 = arith.mulf %134, %133 : vector<16x64xf32>
    %136 = arith.addf %131, %135 : vector<16x64xf32>
    %cst_44 = arith.constant 0.797884583 : f32
    %137 = vector.broadcast %cst_44 : f32 to vector<16x64xf32>
    %138 = arith.mulf %137, %136 : vector<16x64xf32>
    %139 = math.tanh %138 : vector<16x64xf32>
    %cst_45 = arith.constant 1.000000e+00 : f32
    %140 = vector.broadcast %cst_45 : f32 to vector<16x64xf32>
    %141 = arith.addf %140, %139 : vector<16x64xf32>
    %cst_46 = arith.constant 5.000000e-01 : f32
    %142 = vector.broadcast %cst_46 : f32 to vector<16x64xf32>
    %143 = arith.mulf %142, %141 : vector<16x64xf32>
    %144 = arith.mulf %131, %143 : vector<16x64xf32>
    %c0_47 = arith.constant 0 : index
    %c0_48 = arith.constant 0 : index
    %c640 = arith.constant 640 : index
    %145 = vector.load %arg3[%c0_47, %c0_48, %c640] : memref<2x64x768xbf16, #tpu.memory_space<vmem>>, vector<1x64x32xbf16>
    %146 = vector.shape_cast %145 : vector<1x64x32xbf16> to vector<64x32xbf16>
    %147 = arith.truncf %144 : vector<16x64xf32> to vector<16x64xbf16>
    %cst_49 = arith.constant dense<0.000000e+00> : vector<16x32xf32>
    %148 = tpu.matmul %147, %146, %cst_49 {dimension_numbers = #tpu.dot_dimension_numbers<[1], [0], [0], [1], [0, 0, 1, 1], [], []>} : vector<16x64xbf16>, vector<64x32xbf16>, vector<16x32xf32> -> vector<16x32xf32>
    %c9 = arith.constant 9 : index
    %c0_50 = arith.constant 0 : index
    %149 = vector.load %arg2[%c9, %c0_50] : memref<20x384xf32, #tpu.memory_space<vmem>>, vector<1x32xf32>
    %150 = vector.broadcast %149 : vector<1x32xf32> to vector<16x32xf32>
    %151 = arith.addf %148, %150 : vector<16x32xf32>
    %152 = arith.addf %151, %124 : vector<16x32xf32>
    %c10 = arith.constant 10 : index
    %c0_51 = arith.constant 0 : index
    %153 = vector.load %arg2[%c10, %c0_51] : memref<20x384xf32, #tpu.memory_space<vmem>>, vector<1x32xf32>
    %c11 = arith.constant 11 : index
    %c0_52 = arith.constant 0 : index
    %154 = vector.load %arg2[%c11, %c0_52] : memref<20x384xf32, #tpu.memory_space<vmem>>, vector<1x32xf32>
    %cst_53 = arith.constant dense<0.000000e+00> : vector<16xf32>
    %155 = vector.multi_reduction <add>, %152, %cst_53 [1] : vector<16x32xf32> to vector<16xf32>
    %156 = vector.shape_cast %155 : vector<16xf32> to vector<16x1xf32>
    %cst_54 = arith.constant 3.200000e+01 : f32
    %157 = vector.broadcast %cst_54 : f32 to vector<16x1xf32>
    %158 = arith.divf %156, %157 : vector<16x1xf32>
    %159 = vector.broadcast %158 : vector<16x1xf32> to vector<16x32xf32>
    %160 = arith.subf %152, %159 : vector<16x32xf32>
    %161 = arith.mulf %160, %160 : vector<16x32xf32>
    %cst_55 = arith.constant dense<0.000000e+00> : vector<16xf32>
    %162 = vector.multi_reduction <add>, %161, %cst_55 [1] : vector<16x32xf32> to vector<16xf32>
    %163 = vector.shape_cast %162 : vector<16xf32> to vector<16x1xf32>
    %cst_56 = arith.constant 3.200000e+01 : f32
    %164 = vector.broadcast %cst_56 : f32 to vector<16x1xf32>
    %165 = arith.divf %163, %164 : vector<16x1xf32>
    %166 = vector.broadcast %158 : vector<16x1xf32> to vector<16x32xf32>
    %167 = arith.subf %152, %166 : vector<16x32xf32>
    %cst_57 = arith.constant 9.99999974E-6 : f32
    %168 = vector.broadcast %cst_57 : f32 to vector<16x1xf32>
    %169 = arith.addf %165, %168 : vector<16x1xf32>
    %170 = math.rsqrt %169 : vector<16x1xf32>
    %171 = vector.broadcast %170 : vector<16x1xf32> to vector<16x32xf32>
    %172 = arith.mulf %167, %171 : vector<16x32xf32>
    %173 = vector.broadcast %153 : vector<1x32xf32> to vector<16x32xf32>
    %174 = arith.mulf %172, %173 : vector<16x32xf32>
    %175 = vector.broadcast %154 : vector<1x32xf32> to vector<16x32xf32>
    %176 = arith.addf %174, %175 : vector<16x32xf32>
    %c1_58 = arith.constant 1 : index
    %c0_59 = arith.constant 0 : index
    %c0_60 = arith.constant 0 : index
    %177 = vector.load %arg3[%c1_58, %c0_59, %c0_60] : memref<2x64x768xbf16, #tpu.memory_space<vmem>>, vector<1x32x384xbf16>
    %178 = vector.shape_cast %177 : vector<1x32x384xbf16> to vector<32x384xbf16>
    %179 = arith.truncf %176 : vector<16x32xf32> to vector<16x32xbf16>
    %cst_61 = arith.constant dense<0.000000e+00> : vector<16x384xf32>
    %180 = tpu.matmul %179, %178, %cst_61 {dimension_numbers = #tpu.dot_dimension_numbers<[1], [0], [0], [1], [0, 0, 1, 1], [], []>} : vector<16x32xbf16>, vector<32x384xbf16>, vector<16x384xf32> -> vector<16x384xf32>
    %c12 = arith.constant 12 : index
    %c0_62 = arith.constant 0 : index
    %181 = vector.load %arg2[%c12, %c0_62] : memref<20x384xf32, #tpu.memory_space<vmem>>, vector<1x384xf32>
    %182 = vector.broadcast %181 : vector<1x384xf32> to vector<16x384xf32>
    %183 = arith.addf %180, %182 : vector<16x384xf32>
    %184 = vector.extract_strided_slice %183 {offsets = [0, 0], sizes = [16, 32], strides = [1, 1]} : vector<16x384xf32> to vector<16x32xf32>
    %185 = vector.extract_strided_slice %183 {offsets = [0, 128], sizes = [16, 32], strides = [1, 1]} : vector<16x384xf32> to vector<16x32xf32>
    %186 = vector.extract_strided_slice %183 {offsets = [0, 256], sizes = [16, 32], strides = [1, 1]} : vector<16x384xf32> to vector<16x32xf32>
    %cst_63 = arith.constant 0.000000e+00 : f32
    %187 = vector.broadcast %cst_63 : f32 to vector<16x32xf32>
    %188 = vector.extract_strided_slice %184 {offsets = [0, 0], sizes = [16, 16], strides = [1, 1]} : vector<16x32xf32> to vector<16x16xf32>
    %189 = vector.shape_cast %188 : vector<16x16xf32> to vector<2x8x16xf32>
    %190 = vector.extract_strided_slice %185 {offsets = [0, 0], sizes = [16, 16], strides = [1, 1]} : vector<16x32xf32> to vector<16x16xf32>
    %191 = vector.shape_cast %190 : vector<16x16xf32> to vector<2x8x16xf32>
    %192 = vector.extract_strided_slice %186 {offsets = [0, 0], sizes = [16, 16], strides = [1, 1]} : vector<16x32xf32> to vector<16x16xf32>
    %193 = vector.shape_cast %192 : vector<16x16xf32> to vector<2x8x16xf32>
    %194 = arith.truncf %189 : vector<2x8x16xf32> to vector<2x8x16xbf16>
    %195 = arith.truncf %191 : vector<2x8x16xf32> to vector<2x8x16xbf16>
    "tpu.trace_start"() <{level = 10 : i32, message = "bqd,bkd->bqk"}> : () -> ()
    %cst_64 = arith.constant dense<0.000000e+00> : vector<2x8x8xf32>
    %196 = tpu.matmul %194, %195, %cst_64 {dimension_numbers = #tpu.dot_dimension_numbers<[2], [2], [1], [1], [0, 0, 0, 1, 1, 1], [0], [0]>} : vector<2x8x16xbf16>, vector<2x8x16xbf16>, vector<2x8x8xf32> -> vector<2x8x8xf32>
    "tpu.trace_stop"() : () -> ()
    %197 = arith.addf %196, %2 : vector<2x8x8xf32>
    %cst_65 = arith.constant dense<0xFF800000> : vector<2x8xf32>
    %198 = vector.multi_reduction <maximumf>, %197, %cst_65 [2] : vector<2x8x8xf32> to vector<2x8xf32>
    %199 = vector.shape_cast %198 : vector<2x8xf32> to vector<2x8x1xf32>
    %200 = vector.broadcast %199 : vector<2x8x1xf32> to vector<2x8x8xf32>
    %201 = arith.subf %197, %200 : vector<2x8x8xf32>
    %202 = math.exp %201 : vector<2x8x8xf32>
    %cst_66 = arith.constant dense<0.000000e+00> : vector<2x8xf32>
    %203 = vector.multi_reduction <add>, %202, %cst_66 [2] : vector<2x8x8xf32> to vector<2x8xf32>
    %204 = vector.shape_cast %203 : vector<2x8xf32> to vector<2x8x1xf32>
    %205 = tpu.reciprocal %204 {approx = true} : vector<2x8x1xf32> -> vector<2x8x1xf32>
    %206 = vector.broadcast %205 : vector<2x8x1xf32> to vector<2x8x8xf32>
    %207 = arith.mulf %202, %206 : vector<2x8x8xf32>
    %208 = arith.truncf %207 : vector<2x8x8xf32> to vector<2x8x8xbf16>
    %209 = arith.truncf %193 : vector<2x8x16xf32> to vector<2x8x16xbf16>
    "tpu.trace_start"() <{level = 10 : i32, message = "bqk,bkd->bqd"}> : () -> ()
    %cst_67 = arith.constant dense<0.000000e+00> : vector<2x8x16xf32>
    %210 = tpu.matmul %208, %209, %cst_67 {dimension_numbers = #tpu.dot_dimension_numbers<[2], [1], [1], [2], [0, 0, 0, 1, 1, 2], [0], [0]>} : vector<2x8x8xbf16>, vector<2x8x16xbf16>, vector<2x8x16xf32> -> vector<2x8x16xf32>
    "tpu.trace_stop"() : () -> ()
    %211 = vector.shape_cast %210 : vector<2x8x16xf32> to vector<16x16xf32>
    %c1_68 = arith.constant 1 : index
    %c0_69 = arith.constant 0 : index
    %c384_70 = arith.constant 384 : index
    %212 = vector.load %arg3[%c1_68, %c0_69, %c384_70] : memref<2x64x768xbf16, #tpu.memory_space<vmem>>, vector<1x16x32xbf16>
    %213 = vector.shape_cast %212 : vector<1x16x32xbf16> to vector<16x32xbf16>
    %214 = arith.truncf %211 : vector<16x16xf32> to vector<16x16xbf16>
    %cst_71 = arith.constant dense<0.000000e+00> : vector<16x32xf32>
    %215 = tpu.matmul %214, %213, %cst_71 {dimension_numbers = #tpu.dot_dimension_numbers<[1], [0], [0], [1], [0, 0, 1, 1], [], []>} : vector<16x16xbf16>, vector<16x32xbf16>, vector<16x32xf32> -> vector<16x32xf32>
    %216 = arith.addf %187, %215 : vector<16x32xf32>
    %217 = vector.extract_strided_slice %184 {offsets = [0, 16], sizes = [16, 16], strides = [1, 1]} : vector<16x32xf32> to vector<16x16xf32>
    %218 = vector.shape_cast %217 : vector<16x16xf32> to vector<2x8x16xf32>
    %219 = vector.extract_strided_slice %185 {offsets = [0, 16], sizes = [16, 16], strides = [1, 1]} : vector<16x32xf32> to vector<16x16xf32>
    %220 = vector.shape_cast %219 : vector<16x16xf32> to vector<2x8x16xf32>
    %221 = vector.extract_strided_slice %186 {offsets = [0, 16], sizes = [16, 16], strides = [1, 1]} : vector<16x32xf32> to vector<16x16xf32>
    %222 = vector.shape_cast %221 : vector<16x16xf32> to vector<2x8x16xf32>
    %223 = arith.truncf %218 : vector<2x8x16xf32> to vector<2x8x16xbf16>
    %224 = arith.truncf %220 : vector<2x8x16xf32> to vector<2x8x16xbf16>
    "tpu.trace_start"() <{level = 10 : i32, message = "bqd,bkd->bqk"}> : () -> ()
    %cst_72 = arith.constant dense<0.000000e+00> : vector<2x8x8xf32>
    %225 = tpu.matmul %223, %224, %cst_72 {dimension_numbers = #tpu.dot_dimension_numbers<[2], [2], [1], [1], [0, 0, 0, 1, 1, 1], [0], [0]>} : vector<2x8x16xbf16>, vector<2x8x16xbf16>, vector<2x8x8xf32> -> vector<2x8x8xf32>
    "tpu.trace_stop"() : () -> ()
    %226 = arith.addf %225, %2 : vector<2x8x8xf32>
    %cst_73 = arith.constant dense<0xFF800000> : vector<2x8xf32>
    %227 = vector.multi_reduction <maximumf>, %226, %cst_73 [2] : vector<2x8x8xf32> to vector<2x8xf32>
    %228 = vector.shape_cast %227 : vector<2x8xf32> to vector<2x8x1xf32>
    %229 = vector.broadcast %228 : vector<2x8x1xf32> to vector<2x8x8xf32>
    %230 = arith.subf %226, %229 : vector<2x8x8xf32>
    %231 = math.exp %230 : vector<2x8x8xf32>
    %cst_74 = arith.constant dense<0.000000e+00> : vector<2x8xf32>
    %232 = vector.multi_reduction <add>, %231, %cst_74 [2] : vector<2x8x8xf32> to vector<2x8xf32>
    %233 = vector.shape_cast %232 : vector<2x8xf32> to vector<2x8x1xf32>
    %234 = tpu.reciprocal %233 {approx = true} : vector<2x8x1xf32> -> vector<2x8x1xf32>
    %235 = vector.broadcast %234 : vector<2x8x1xf32> to vector<2x8x8xf32>
    %236 = arith.mulf %231, %235 : vector<2x8x8xf32>
    %237 = arith.truncf %236 : vector<2x8x8xf32> to vector<2x8x8xbf16>
    %238 = arith.truncf %222 : vector<2x8x16xf32> to vector<2x8x16xbf16>
    "tpu.trace_start"() <{level = 10 : i32, message = "bqk,bkd->bqd"}> : () -> ()
    %cst_75 = arith.constant dense<0.000000e+00> : vector<2x8x16xf32>
    %239 = tpu.matmul %237, %238, %cst_75 {dimension_numbers = #tpu.dot_dimension_numbers<[2], [1], [1], [2], [0, 0, 0, 1, 1, 2], [0], [0]>} : vector<2x8x8xbf16>, vector<2x8x16xbf16>, vector<2x8x16xf32> -> vector<2x8x16xf32>
    "tpu.trace_stop"() : () -> ()
    %240 = vector.shape_cast %239 : vector<2x8x16xf32> to vector<16x16xf32>
    %c1_76 = arith.constant 1 : index
    %c16_77 = arith.constant 16 : index
    %c384_78 = arith.constant 384 : index
    %241 = vector.load %arg3[%c1_76, %c16_77, %c384_78] : memref<2x64x768xbf16, #tpu.memory_space<vmem>>, vector<1x16x32xbf16>
    %242 = vector.shape_cast %241 : vector<1x16x32xbf16> to vector<16x32xbf16>
    %243 = arith.truncf %240 : vector<16x16xf32> to vector<16x16xbf16>
    %cst_79 = arith.constant dense<0.000000e+00> : vector<16x32xf32>
    %244 = tpu.matmul %243, %242, %cst_79 {dimension_numbers = #tpu.dot_dimension_numbers<[1], [0], [0], [1], [0, 0, 1, 1], [], []>} : vector<16x16xbf16>, vector<16x32xbf16>, vector<16x32xf32> -> vector<16x32xf32>
    %245 = arith.addf %216, %244 : vector<16x32xf32>
    %c13 = arith.constant 13 : index
    %c0_80 = arith.constant 0 : index
    %246 = vector.load %arg2[%c13, %c0_80] : memref<20x384xf32, #tpu.memory_space<vmem>>, vector<1x32xf32>
    %247 = vector.broadcast %246 : vector<1x32xf32> to vector<16x32xf32>
    %248 = arith.addf %245, %247 : vector<16x32xf32>
    %249 = arith.addf %248, %176 : vector<16x32xf32>
    %c14 = arith.constant 14 : index
    %c0_81 = arith.constant 0 : index
    %250 = vector.load %arg2[%c14, %c0_81] : memref<20x384xf32, #tpu.memory_space<vmem>>, vector<1x32xf32>
    %c15 = arith.constant 15 : index
    %c0_82 = arith.constant 0 : index
    %251 = vector.load %arg2[%c15, %c0_82] : memref<20x384xf32, #tpu.memory_space<vmem>>, vector<1x32xf32>
    %cst_83 = arith.constant dense<0.000000e+00> : vector<16xf32>
    %252 = vector.multi_reduction <add>, %249, %cst_83 [1] : vector<16x32xf32> to vector<16xf32>
    %253 = vector.shape_cast %252 : vector<16xf32> to vector<16x1xf32>
    %cst_84 = arith.constant 3.200000e+01 : f32
    %254 = vector.broadcast %cst_84 : f32 to vector<16x1xf32>
    %255 = arith.divf %253, %254 : vector<16x1xf32>
    %256 = vector.broadcast %255 : vector<16x1xf32> to vector<16x32xf32>
    %257 = arith.subf %249, %256 : vector<16x32xf32>
    %258 = arith.mulf %257, %257 : vector<16x32xf32>
    %cst_85 = arith.constant dense<0.000000e+00> : vector<16xf32>
    %259 = vector.multi_reduction <add>, %258, %cst_85 [1] : vector<16x32xf32> to vector<16xf32>
    %260 = vector.shape_cast %259 : vector<16xf32> to vector<16x1xf32>
    %cst_86 = arith.constant 3.200000e+01 : f32
    %261 = vector.broadcast %cst_86 : f32 to vector<16x1xf32>
    %262 = arith.divf %260, %261 : vector<16x1xf32>
    %263 = vector.broadcast %255 : vector<16x1xf32> to vector<16x32xf32>
    %264 = arith.subf %249, %263 : vector<16x32xf32>
    %cst_87 = arith.constant 9.99999974E-6 : f32
    %265 = vector.broadcast %cst_87 : f32 to vector<16x1xf32>
    %266 = arith.addf %262, %265 : vector<16x1xf32>
    %267 = math.rsqrt %266 : vector<16x1xf32>
    %268 = vector.broadcast %267 : vector<16x1xf32> to vector<16x32xf32>
    %269 = arith.mulf %264, %268 : vector<16x32xf32>
    %270 = vector.broadcast %250 : vector<1x32xf32> to vector<16x32xf32>
    %271 = arith.mulf %269, %270 : vector<16x32xf32>
    %272 = vector.broadcast %251 : vector<1x32xf32> to vector<16x32xf32>
    %273 = arith.addf %271, %272 : vector<16x32xf32>
    %c1_88 = arith.constant 1 : index
    %c0_89 = arith.constant 0 : index
    %c512_90 = arith.constant 512 : index
    %274 = vector.load %arg3[%c1_88, %c0_89, %c512_90] : memref<2x64x768xbf16, #tpu.memory_space<vmem>>, vector<1x32x64xbf16>
    %275 = vector.shape_cast %274 : vector<1x32x64xbf16> to vector<32x64xbf16>
    %276 = arith.truncf %273 : vector<16x32xf32> to vector<16x32xbf16>
    %cst_91 = arith.constant dense<0.000000e+00> : vector<16x64xf32>
    %277 = tpu.matmul %276, %275, %cst_91 {dimension_numbers = #tpu.dot_dimension_numbers<[1], [0], [0], [1], [0, 0, 1, 1], [], []>} : vector<16x32xbf16>, vector<32x64xbf16>, vector<16x64xf32> -> vector<16x64xf32>
    %c16_92 = arith.constant 16 : index
    %c0_93 = arith.constant 0 : index
    %278 = vector.load %arg2[%c16_92, %c0_93] : memref<20x384xf32, #tpu.memory_space<vmem>>, vector<1x64xf32>
    %279 = vector.broadcast %278 : vector<1x64xf32> to vector<16x64xf32>
    %280 = arith.addf %277, %279 : vector<16x64xf32>
    %281 = arith.mulf %280, %280 : vector<16x64xf32>
    %282 = arith.mulf %280, %281 : vector<16x64xf32>
    %cst_94 = arith.constant 4.471500e-02 : f32
    %283 = vector.broadcast %cst_94 : f32 to vector<16x64xf32>
    %284 = arith.mulf %283, %282 : vector<16x64xf32>
    %285 = arith.addf %280, %284 : vector<16x64xf32>
    %cst_95 = arith.constant 0.797884583 : f32
    %286 = vector.broadcast %cst_95 : f32 to vector<16x64xf32>
    %287 = arith.mulf %286, %285 : vector<16x64xf32>
    %288 = math.tanh %287 : vector<16x64xf32>
    %cst_96 = arith.constant 1.000000e+00 : f32
    %289 = vector.broadcast %cst_96 : f32 to vector<16x64xf32>
    %290 = arith.addf %289, %288 : vector<16x64xf32>
    %cst_97 = arith.constant 5.000000e-01 : f32
    %291 = vector.broadcast %cst_97 : f32 to vector<16x64xf32>
    %292 = arith.mulf %291, %290 : vector<16x64xf32>
    %293 = arith.mulf %280, %292 : vector<16x64xf32>
    %c1_98 = arith.constant 1 : index
    %c0_99 = arith.constant 0 : index
    %c640_100 = arith.constant 640 : index
    %294 = vector.load %arg3[%c1_98, %c0_99, %c640_100] : memref<2x64x768xbf16, #tpu.memory_space<vmem>>, vector<1x64x32xbf16>
    %295 = vector.shape_cast %294 : vector<1x64x32xbf16> to vector<64x32xbf16>
    %296 = arith.truncf %293 : vector<16x64xf32> to vector<16x64xbf16>
    %cst_101 = arith.constant dense<0.000000e+00> : vector<16x32xf32>
    %297 = tpu.matmul %296, %295, %cst_101 {dimension_numbers = #tpu.dot_dimension_numbers<[1], [0], [0], [1], [0, 0, 1, 1], [], []>} : vector<16x64xbf16>, vector<64x32xbf16>, vector<16x32xf32> -> vector<16x32xf32>
    %c17 = arith.constant 17 : index
    %c0_102 = arith.constant 0 : index
    %298 = vector.load %arg2[%c17, %c0_102] : memref<20x384xf32, #tpu.memory_space<vmem>>, vector<1x32xf32>
    %299 = vector.broadcast %298 : vector<1x32xf32> to vector<16x32xf32>
    %300 = arith.addf %297, %299 : vector<16x32xf32>
    %301 = arith.addf %300, %273 : vector<16x32xf32>
    %c18 = arith.constant 18 : index
    %c0_103 = arith.constant 0 : index
    %302 = vector.load %arg2[%c18, %c0_103] : memref<20x384xf32, #tpu.memory_space<vmem>>, vector<1x32xf32>
    %c19 = arith.constant 19 : index
    %c0_104 = arith.constant 0 : index
    %303 = vector.load %arg2[%c19, %c0_104] : memref<20x384xf32, #tpu.memory_space<vmem>>, vector<1x32xf32>
    %cst_105 = arith.constant dense<0.000000e+00> : vector<16xf32>
    %304 = vector.multi_reduction <add>, %301, %cst_105 [1] : vector<16x32xf32> to vector<16xf32>
    %305 = vector.shape_cast %304 : vector<16xf32> to vector<16x1xf32>
    %cst_106 = arith.constant 3.200000e+01 : f32
    %306 = vector.broadcast %cst_106 : f32 to vector<16x1xf32>
    %307 = arith.divf %305, %306 : vector<16x1xf32>
    %308 = vector.broadcast %307 : vector<16x1xf32> to vector<16x32xf32>
    %309 = arith.subf %301, %308 : vector<16x32xf32>
    %310 = arith.mulf %309, %309 : vector<16x32xf32>
    %cst_107 = arith.constant dense<0.000000e+00> : vector<16xf32>
    %311 = vector.multi_reduction <add>, %310, %cst_107 [1] : vector<16x32xf32> to vector<16xf32>
    %312 = vector.shape_cast %311 : vector<16xf32> to vector<16x1xf32>
    %cst_108 = arith.constant 3.200000e+01 : f32
    %313 = vector.broadcast %cst_108 : f32 to vector<16x1xf32>
    %314 = arith.divf %312, %313 : vector<16x1xf32>
    %315 = vector.broadcast %307 : vector<16x1xf32> to vector<16x32xf32>
    %316 = arith.subf %301, %315 : vector<16x32xf32>
    %cst_109 = arith.constant 9.99999974E-6 : f32
    %317 = vector.broadcast %cst_109 : f32 to vector<16x1xf32>
    %318 = arith.addf %314, %317 : vector<16x1xf32>
    %319 = math.rsqrt %318 : vector<16x1xf32>
    %320 = vector.broadcast %319 : vector<16x1xf32> to vector<16x32xf32>
    %321 = arith.mulf %316, %320 : vector<16x32xf32>
    %322 = vector.broadcast %302 : vector<1x32xf32> to vector<16x32xf32>
    %323 = arith.mulf %321, %322 : vector<16x32xf32>
    %324 = vector.broadcast %303 : vector<1x32xf32> to vector<16x32xf32>
    %325 = arith.addf %323, %324 : vector<16x32xf32>
    %c0_110 = arith.constant 0 : index
    %c0_111 = arith.constant 0 : index
    %326 = vector.load %arg4[%c0_110, %c0_111] : memref<32x256xbf16, #tpu.memory_space<vmem>>, vector<32x32xbf16>
    %327 = arith.truncf %325 : vector<16x32xf32> to vector<16x32xbf16>
    %cst_112 = arith.constant dense<0.000000e+00> : vector<16x32xf32>
    %328 = tpu.matmul %327, %326, %cst_112 {dimension_numbers = #tpu.dot_dimension_numbers<[1], [0], [0], [1], [0, 0, 1, 1], [], []>} : vector<16x32xbf16>, vector<32x32xbf16>, vector<16x32xf32> -> vector<16x32xf32>
    %c2 = arith.constant 2 : index
    %c0_113 = arith.constant 0 : index
    %329 = vector.load %arg2[%c2, %c0_113] : memref<20x384xf32, #tpu.memory_space<vmem>>, vector<1x32xf32>
    %330 = vector.broadcast %329 : vector<1x32xf32> to vector<16x32xf32>
    %331 = arith.addf %328, %330 : vector<16x32xf32>
    %332 = arith.negf %331 : vector<16x32xf32>
    %333 = math.exp %332 : vector<16x32xf32>
    %cst_114 = arith.constant 1.000000e+00 : f32
    %334 = vector.broadcast %cst_114 : f32 to vector<16x32xf32>
    %335 = arith.addf %334, %333 : vector<16x32xf32>
    %336 = arith.divf %334, %335 : vector<16x32xf32>
    %337 = arith.mulf %331, %336 : vector<16x32xf32>
    %c0_115 = arith.constant 0 : index
    %c128 = arith.constant 128 : index
    %338 = vector.load %arg4[%c0_115, %c128] : memref<32x256xbf16, #tpu.memory_space<vmem>>, vector<32x128xbf16>
    %339 = arith.truncf %337 : vector<16x32xf32> to vector<16x32xbf16>
    %cst_116 = arith.constant dense<0.000000e+00> : vector<16x128xf32>
    %340 = tpu.matmul %339, %338, %cst_116 {dimension_numbers = #tpu.dot_dimension_numbers<[1], [0], [0], [1], [0, 0, 1, 1], [], []>} : vector<16x32xbf16>, vector<32x128xbf16>, vector<16x128xf32> -> vector<16x128xf32>
    %c3 = arith.constant 3 : index
    %c0_117 = arith.constant 0 : index
    %341 = vector.load %arg2[%c3, %c0_117] : memref<20x384xf32, #tpu.memory_space<vmem>>, vector<1x128xf32>
    %342 = vector.broadcast %341 : vector<1x128xf32> to vector<16x128xf32>
    %343 = arith.addf %340, %342 : vector<16x128xf32>
    %c0_118 = arith.constant 0 : index
    %c0_119 = arith.constant 0 : index
    %344 = vector.load %arg5[%c0_118, %c0_119] : memref<16x128xf32, #tpu.memory_space<vmem>>, vector<16x128xf32>
    tpu.vector_store %arg5[%c0_118, %c0_119], %343 {strides = array<i32>} : memref<16x128xf32, #tpu.memory_space<vmem>>, vector<16x128xf32>,
    return
  }
}

</mosaic_0001>

<bundles_post_ra>
// kernel: tpu_custom_call.1
= control target key start
LH: loop header
LB: loop body
LE: loop exit
PB: predicated region body
PF: predicated region fallthrough
CT: control target
= control target key end

     0   :  { %10 = vsyncpa [#allocation3], 0  ;;  %s2155_s0 = inlined_call_operand.hbm [shape: f32[16,32], index: 0, kind: input, shape index: {}]   ;;  %s2156_s1 = inlined_call_operand.hbm [shape: f32[2,1,8], index: 1, kind: input, shape index: {}]   ;;  %s2157_s2 = inlined_call_operand.hbm [shape: f32[20,384], index: 2, kind: input, shape index: {}]   ;;  %s2158_s3 = inlined_call_operand.hbm [shape: bf16[2,64,768], index: 3, kind: input, shape index: {}]   ;;  %s2159_s4 = inlined_call_operand.hbm [shape: bf16[32,256], index: 4, kind: input, shape index: {}]   ;;  %s2160_s5 = inlined_call_operand.hbm [shape: f32[16,128], index: 5, kind: output, shape index: {}]  }
   0x1   :  { %11 = vsyncpa [#allocation6], 0 }
   0x2   :  { %12 = vsyncpa [#allocation9], 0  ;;  %s31_s20 = sshll.u32 %s2156_s1, 4  ;;  %s32_s20 = int_to_ptr.hbm [resolvable:$true] %s31_s20 }
   0x3   :  { %13 = vsyncpa [#allocation4], 0  ;;  %s1926_s21 = smov [#allocation5]   ;;  %s1927_s23 = smov 16  }
   0x4   :  { %s33_s22 = sshll.u32 %s1926_s21, 4  ;;  %s1928_s24 = smov 1   ;;  %s34_s22 = int_to_ptr.vmem [resolvable:$true] %s33_s22 }
   0x5   :  { %39 = dma.hbm_to_vmem [thread:$0]  %s32_s20, 32, %s34_s22, [#allocation6], %s1927_s23, %s1927_s23, %s1928_s24  }
   0x6   :  { %s57_s27 = sshll.u32 %s2158_s3, 4  ;;  %s1929_s28 = smov [#allocation8]   ;;  %s58_s27 = int_to_ptr.hbm [resolvable:$true] %s57_s27 }
   0x7   :  { %s59_s29 = sshll.u32 %s1929_s28, 4  ;;  %s18_s7 = sshll.u32 %s2155_s0, 4  ;;  %s60_s29 = int_to_ptr.vmem [resolvable:$true] %s59_s29  ;;  %s19_s7 = int_to_ptr.hbm [resolvable:$true] %s18_s7 }
   0x8   :  { %s1930_s1 = smov 384   ;;  %s1931_s8 = smov 24  }
   0x9   :  { %65 = dma.hbm_to_vmem [thread:$0]  %s58_s27, 6144, %s60_s29, [#allocation9], %s1930_s1, %s1930_s1, %s1931_s8  }
   0xa   :  { %s1932_s9 = smov [#allocation2]   ;;  %s44_s13 = sshll.u32 %s2157_s2, 4  ;;  %s45_s13 = int_to_ptr.hbm [resolvable:$true] %s44_s13 }
   0xb   :  { %s20_s10 = sshll.u32 %s1932_s9, 4  ;;  %s1933_s3 = smov 128   ;;  %s21_s10 = int_to_ptr.vmem [resolvable:$true] %s20_s10 }
   0xc   :  { %s1934_s14 = smov 8   ;;  %s1935_s0 = smov [#allocation7]  }
   0xd   :  { %26 = dma.hbm_to_vmem [thread:$0]  %s19_s7, 256, %s21_s10, [#allocation3], %s1933_s3, %s1933_s3, %s1934_s14  }
   0xe   :  { %s46_s15 = sshll.u32 %s1935_s0, 4  ;;  %s70_s18 = sshll.u32 %s2159_s4, 4  ;;  %s47_s15 = int_to_ptr.vmem [resolvable:$true] %s46_s15  ;;  %s71_s18 = int_to_ptr.hbm [resolvable:$true] %s70_s18 }
   0xf   :  { %52 = dma.hbm_to_vmem [thread:$0]  %s45_s13, 1152, %s47_s15, [#allocation6], %s1930_s1, %s1930_s1, %s1931_s8  }
  0x10   :  { %s1936_s19 = smov [#allocation10]  }
  0x11   :  { %s72_s20 = sshll.u32 %s1936_s19, 4  ;;  %s73_s20 = int_to_ptr.vmem [resolvable:$true] %s72_s20 }
  0x12   :  { %78 = dma.hbm_to_vmem [thread:$0]  %s71_s18, 512, %s73_s20, [#allocation9], %s1933_s3, %s1933_s3, %s1934_s14  }
  0x13   :  { %1918 = dma.done.wait [#allocation3], 256  }
  0x14   :  { %1919 = vsyncadd [#allocation3], 4294967040 }
  0x15   :  { %1920 = dma.done.wait [#allocation6], 1184  }
  0x16   :  { %1921 = vsyncadd [#allocation6], 4294966112 }
  0x17   :  { %1922 = dma.done.wait [#allocation9], 6656  }
  0x18   :  { %1923 = vsyncadd [#allocation9], 4294960640  ;;  %vm112_vm0 = vcmask 261120   ;;  %v108_v0 = vld [vmem:[#allocation2] sm:$0xff]  ;;  %v109_v2 = vld [vmem:[#allocation2 + $0x8] sm:$0xff]  ;;  %v1937_v4 = vmov 32.0  }
  0x19   :  { %v113_v1 = vsel %vm112_vm0, %v108_v0, 0.0  ;;  %v116_v3 = vsel %vm112_vm0, %v109_v2, 0.0  ;;  %1704 = vrcp.f32 %v1937_v4  ;;  %v1508_v21 = vld [vmem:[#allocation8 + $0x30] sm:$0xf]  ;;  %v1660_v22 = vld [vmem:[#allocation8 + $0x44] sm:$0xf0] }
  0x1a   :  { %114 = vadd.xlane.f32.xlu0 %v113_v1  ;;  %v1659_v23 = vld [vmem:[#allocation8 + $0x34] sm:$0xf]  ;;  %v1509_v24 = vor.u32 %v1660_v22, %v1508_v21  ;;  %v1510_v25 = vld [vmem:[#allocation8 + $0x48] sm:$0xf0]  ;;  %v1516_v26 = vld [vmem:[#allocation8 + $0x38] sm:$0xf] }
  0x1b   :  { %v1661_v27 = vld [vmem:[#allocation8 + $0x4c] sm:$0xf0]  ;;  %v1513_v28 = vor.u32 %v1659_v23, %v1510_v25  ;;  %v1496_v30 = vld [vmem:[#allocation8] sm:$0xf]  ;;  %v1657_v31 = vld [vmem:[#allocation8 + $0x14] sm:$0xf0] }
  0x1c   :  { %v1517_v29 = vor.u32 %v1661_v27, %v1516_v26  ;;  %v1656_v32 = vld [vmem:[#allocation8 + $0x4] sm:$0xf]  ;;  %227 = vmatpush.bf16.msra.mxu0 %v1509_v24  ;;  %v1497_v34 = vor.u32 %v1657_v31, %v1496_v30  ;;  %v1498_v35 = vld [vmem:[#allocation8 + $0x18] sm:$0xf0]  ;;  %v1504_v36 = vld [vmem:[#allocation8 + $0x8] sm:$0xf] }
  0x1d   :  { %v1658_v37 = vld [vmem:[#allocation8 + $0x1c] sm:$0xf0]  ;;  %241 = vmatpush.bf16.msra.mxu1 %v1513_v28  ;;  %v1501_v39 = vor.u32 %v1656_v32, %v1498_v35  ;;  %v110_v59 = vld [vmem:[#allocation7] ss:$0 sm:$0xff]  ;;  %v111_v63 = vld [vmem:[#allocation7 + $0x1] ss:$0 sm:$0xff] }
  0x1e   :  { %255 = vmatpush.bf16.msra.mxu2 %v1517_v29  ;;  %v1505_v40 = vor.u32 %v1658_v37, %v1504_v36  ;;  %v178_v4 = vld [vmem:[#allocation7 + $0x4] ss:$8 sm:$0x7]  ;;  %vm267_vm8 = vcmask 130048   ;;  %s1938_s2 = smov 112   ;;  %vm336_vm9 = vcmask 1043456  }
  0x1f   :  { %v1705_v5 = vpop.eup %1704  ;;  %vm306_vm10 = vcmask 64512   ;;  %s1939_s4 = smov [#allocation11]   ;;  %s1479_s24 = sshll.u32 %s2160_s5, 4  ;;  %s1480_s24 = int_to_ptr.hbm [resolvable:$true] %s1479_s24 }
  0x20   :  { %v120_v6 = vmul.f32 32.0, %v1705_v5  ;;  %vm124_vm1 = vweird.f32 %v1705_v5  ;;  %228 = vmatpush.bf16.msra.mxu0 %v1497_v34  ;;  %s1477_s21 = sshll.u32 %s1939_s4, 4  ;;  %s1478_s21 = int_to_ptr.vmem [resolvable:$true] %s1477_s21 }
  0x21   :  { %242 = vmatpush.bf16.msra.mxu1 %v1501_v39 }
  0x22   :  { %117 = vadd.xlane.f32.xlu0 %v116_v3  ;;  %v121_v7 = vsub.f32 1.0, %v120_v6  ;;  %256 = vmatpush.bf16.msra.mxu2 %v1505_v40  ;;  %v181_v6 = vperm.slane %v178_v4, 1 }
  0x24   :  { %v122_v8 = vmul.f32 %v1705_v5, %v121_v7 }
  0x26   :  { %v123_v9 = vadd.f32 %v1705_v5, %v122_v8 }
  0x28   :  { %v1993_v10 = vsel %vm124_vm1, %v1705_v5, %v123_v9  ;;  %v180_v5 = vperm.slane %v178_v4, 0 }
  0x8d   :  { %v115_v11 = vpop.xlane.xlu0 %114 }
  0x8e   :  { %v126_v12 = vmul.f32 %v1993_v10, %v115_v11 }
  0x90   :  { %v128_v13 = vsub.f32 %v108_v0, %v126_v12 }
  0x92   :  { %v130_v14 = vmul.f32 %v128_v13, %v128_v13 }
  0x94   :  { %v132_v15 = vsel %vm112_vm0, %v130_v14, 0.0  ;;  %v182_v14 = vperm.slane %v178_v4, 2 }
  0x95   :  { %133 = vadd.xlane.f32.xlu1 %v132_v15  ;;  %v118_v16 = vpop.xlane.xlu0 %117 }
  0x96   :  { %v127_v17 = vmul.f32 %v1993_v10, %v118_v16 }
  0x98   :  { %v129_v18 = vsub.f32 %v109_v2, %v127_v17 }
  0x9a   :  { %v131_v19 = vmul.f32 %v129_v18, %v129_v18 }
  0x9c   :  { %v135_v20 = vsel %vm112_vm0, %v131_v19, 0.0 }
  0x9d   :  { %136 = vadd.xlane.f32.xlu1 %v135_v20 }
 0x108   :  { %v134_v33 = vpop.xlane.xlu1 %133 }
 0x109   :  { %v138_v38 = vmul.f32 %v134_v33, %v1993_v10 }
 0x10b   :  { %v140_v41 = vadd.f32 1e-05, %v138_v38 }
 0x10d   :  { %1706 = vrsqrt.f32 %v140_v41  ;;  %vm148_vm3 = vweird.f32 %v140_v41 }
 0x110   :  { %v137_v42 = vpop.xlane.xlu1 %136 }
 0x111   :  { %v139_v43 = vmul.f32 %v137_v42, %v1993_v10 }
 0x113   :  { %v1707_v44 = vpop.eup %1706  ;;  %v141_v45 = vadd.f32 1e-05, %v139_v43 }
 0x114   :  { %v143_v46 = vmul.f32 %v1707_v44, %v140_v41  ;;  %vm149_vm2 = vweird.f32 %v1707_v44 }
 0x115   :  { %1708 = vrsqrt.f32 %v141_v45  ;;  %vm150_vm4 = vmor %vm148_vm3, %vm149_vm2  ;;  %vm158_vm6 = vweird.f32 %v141_v45  ;;  %vm696_vm2 = vcmask 523264  }
 0x116   :  { %v144_v47 = vmul.f32 %v1707_v44, %v143_v46  ;;  %v2029_v46 = vld [vmem:[#allocation5 + $0x1] ss:$0 sm:$0xff] }
 0x118   :  { %v145_v48 = vmul.f32 0.5, %v144_v47 }
 0x11a   :  { %v146_v49 = vsub.f32 1.5, %v145_v48 }
 0x11b   :  { %v1709_v50 = vpop.eup %1708 }
 0x11c   :  { %v147_v51 = vmul.f32 %v1707_v44, %v146_v49  ;;  %v153_v52 = vmul.f32 %v1709_v50, %v141_v45  ;;  %vm159_vm5 = vweird.f32 %v1709_v50  ;;  %v2027_v45 = vld [vmem:[#allocation5] ss:$0 sm:$0xff] }
 0x11d   :  { %vm160_vm7 = vmor %vm158_vm6, %vm159_vm5 }
 0x11e   :  { %v154_v53 = vmul.f32 %v1709_v50, %v153_v52  ;;  %v151_v54 = vsel %vm150_vm4, %v1707_v44, %v147_v51 }
 0x11f   :  { %v162_v57 = vmul.f32 %v151_v54, %v128_v13 }
 0x120   :  { %v155_v55 = vmul.f32 0.5, %v154_v53 }
 0x121   :  { %v164_v62 = vmul.f32 %v162_v57, %v110_v59 }
 0x122   :  { %v156_v56 = vsub.f32 1.5, %v155_v55 }
 0x123   :  { %v2001_v1 = vadd.f32 %v164_v62, %v111_v63 }
 0x124   :  { %v157_v58 = vmul.f32 %v1709_v50, %v156_v56 }
 0x126   :  { %v161_v60 = vsel %vm160_vm7, %v1709_v50, %v157_v58 }
 0x127   :  { %v163_v61 = vmul.f32 %v161_v60, %v129_v18 }
 0x129   :  { %v165_v0 = vmul.f32 %v163_v61, %v110_v59 }
 0x12b   :  { %v2003_v2 = vadd.f32 %v165_v0, %v111_v63 }
 0x12d   :  { %v176_v3 = vpack.c.bf16 %v2003_v2, %v2001_v1 }
 0x12f   :  { %1518 = vmatmul.msk.bf16.vlgmr.msra.gmra.mxu0 %vm112_vm0, %v176_v3  ;;  %1519 = vmatmul.msk.bf16.vlgmr.msra.gmra.mxu1 %vm112_vm0, %v176_v3 }
 0x130   :  { %1520 = vmatmul.msk.bf16.vlgmr.msra.gmra.mxu2 %vm112_vm0, %v176_v3 }
 0x1ac   :  { %v230_v7 = vpop.f32.mrf.mxu0  ;;  %v244_v8 = vpop.f32.mrf.mxu1 }
 0x1ad   :  { %v231_v9 = vadd.f32 %v230_v7, %v180_v5  ;;  %v245_v11 = vadd.f32 %v244_v8, %v181_v6 }
 0x1af   :  { %v263_v12 = vpack.c.bf16 %v231_v9, %v231_v9  ;;  %v265_v13 = vpack.c.bf16 %v245_v11, %v245_v11 }
 0x1b1   :  { %v376_v15 = vunpack.c.l.b16 %v263_v12  ;;  %v272_v16 = vsel %vm267_vm8, %v265_v13, 0  ;;  %v381_v17 = vunpack.c.l.b16 %v265_v13 }
 0x1b2   :  { %281 = vmatpush.bf16.xpose.msra.mxu3 %v272_v16 }
 0x1b3   :  { %v377_v18 = vpack.c.b16 %v376_v15, %v376_v15  ;;  %v258_v19 = vpop.f32.mrf.mxu2  ;;  %v382_v20 = vpack.c.b16 %v381_v17, %v381_v17 }
 0x1b4   :  { %v259_v21 = vadd.f32 %v258_v19, %v182_v14  ;;  %v232_v22 = vpop.f32.mrf.mxu0  ;;  %v246_v23 = vpop.f32.mrf.mxu1 }
 0x1b5   :  { %v233_v24 = vadd.f32 %v232_v22, %v180_v5  ;;  %v247_v25 = vadd.f32 %v246_v23, %v181_v6  ;;  %383 = vrot.lane.b32.xlu2 %v382_v20, %s1938_s2  ;;  %378 = vrot.lane.b32.xlu0 %v377_v18, %s1938_s2 }
 0x1b6   :  { %v2013_v26 = vpack.c.bf16 %v259_v21, %v259_v21 }
 0x1b7   :  { %v264_v27 = vpack.c.bf16 %v233_v24, %v233_v24  ;;  %v266_v28 = vpack.c.bf16 %v247_v25, %v247_v25 }
 0x1b8   :  { %v338_v29 = vsel %vm336_vm9, %v2013_v26, 0 }
 0x1b9   :  { %v405_v30 = vunpack.c.l.b16 %v264_v27  ;;  %v410_v31 = vunpack.c.l.b16 %v266_v28  ;;  %347 = vmatpush.bf16.msrb.mxu1 %v338_v29  ;;  %1521 = vmatmul.msk.bf16.vlgmr.msra.gmra.mxu3 %vm267_vm8, %v263_v12  ;;  %v291_v32 = vsel %vm267_vm8, %v266_v28, 0 }
 0x1ba   :  { %300 = vmatpush.bf16.xpose.msrb.mxu0 %v291_v32 }
 0x1bb   :  { %v406_v33 = vpack.c.b16 %v405_v30, %v405_v30  ;;  %v411_v34 = vpack.c.b16 %v410_v31, %v410_v31  ;;  %v260_v35 = vpop.f32.mrf.mxu2  ;;  %v458_v31 = vunpack.c.l.b16 %v2013_v26 }
 0x1bc   :  { %v261_v36 = vadd.f32 %v260_v35, %v182_v14 }
 0x1bd   :  { %412 = vrot.lane.b32.xlu2 %v411_v34, %s1938_s2  ;;  %407 = vrot.lane.b32.xlu1 %v406_v33, %s1938_s2  ;;  %v459_v33 = vpack.c.b16 %v458_v31, %v458_v31  ;;  %v1664_v31 = vld [vmem:[#allocation8 + $0x24] sm:$0xf0] }
 0x1be   :  { %v332_v37 = vpack.c.bf16 %v261_v36, %v261_v36 }
 0x1c0   :  { %v357_v38 = vsel %vm336_vm9, %v332_v37, 0  ;;  %v482_v9 = vunpack.c.l.b16 %v332_v37 }
 0x1c1   :  { %366 = vmatpush.bf16.msrb.mxu2 %v357_v38  ;;  %1522 = vmatmul.msk.bf16.vlgmr.msrb.gmra.mxu0 %vm267_vm8, %v264_v27  ;;  %v1536_v38 = vld [vmem:[#allocation8 + $0xc] sm:$0xf] }
 0x1c2   :  { %v483_v12 = vpack.c.b16 %v482_v9, %v482_v9 }
 0x20f   :  { %v384_v39 = vpop.permute.xlu2 %383 }
 0x210   :  { %v389_v40 = vsel %vm267_vm8, %v384_v39, 0  ;;  %v1662_v39 = vld [vmem:[#allocation8 + $0x20] sm:$0xf0] }
 0x211   :  { %398 = vmatpush.bf16.xpose.msrb.mxu3 %v389_v40  ;;  %v1537_v40 = vor.u32 %v1662_v39, %v1536_v38 }
 0x217   :  { %v413_v41 = vpop.permute.xlu2 %412 }
 0x218   :  { %v418_v42 = vsel %vm267_vm8, %v413_v41, 0 }
 0x219   :  { %427 = vmatpush.bf16.xpose.msra.mxu0 %v418_v42 }
 0x221   :  { %547 = vmatpush.bf16.msrb.mxu0 %v1537_v40 }
 0x227   :  { %v379_v43 = vpop.permute.xlu0 %378 }
 0x228   :  { %1525 = vmatmul.msk.bf16.vlgmr.msrb.gmra.mxu3 %vm267_vm8, %v379_v43 }
 0x22f   :  { %v408_v44 = vpop.permute.xlu1 %407 }
 0x230   :  { %1526 = vmatmul.msk.bf16.vlgmr.msra.gmra.mxu0 %vm267_vm8, %v408_v44 }
 0x23c   :  { %v283_v47 = vpop.f32.mrf.mxu3 }
 0x23d   :  { %v284_v48 = vadd.f32 %v2027_v45, %v283_v47 }
 0x23e   :  { %v302_v49 = vpop.f32.mrf.mxu0 }
 0x23f   :  { %v303_v50 = vadd.f32 %v2029_v46, %v302_v49  ;;  %v307_v51 = vsel %vm306_vm10, %v284_v48, -inf }
 0x240   :  { %308 = vmax.xlane.f32.xlu0 %v307_v51 }
 0x241   :  { %v310_v52 = vsel %vm306_vm10, %v303_v50, -inf }
 0x242   :  { %311 = vmax.xlane.f32.xlu2 %v310_v52 }
 0x244   :  { %v285_v53 = vpop.f32.mrf.mxu3 }
 0x246   :  { %v304_v54 = vpop.f32.mrf.mxu0 }
 0x2ab   :  { %v400_v55 = vpop.f32.mrf.mxu3 }
 0x2ac   :  { %v401_v56 = vadd.f32 %v2027_v45, %v400_v55 }
 0x2ad   :  { %v429_v57 = vpop.f32.mrf.mxu0 }
 0x2ae   :  { %v430_v58 = vadd.f32 %v2029_v46, %v429_v57  ;;  %v433_v59 = vsel %vm306_vm10, %v401_v56, -inf  ;;  %v1663_v57 = vld [vmem:[#allocation8 + $0x50] sm:$0xf0] }
 0x2af   :  { %434 = vmax.xlane.f32.xlu2 %v433_v59 }
 0x2b0   :  { %v436_v60 = vsel %vm306_vm10, %v430_v58, -inf }
 0x2b1   :  { %437 = vmax.xlane.f32.xlu1 %v436_v60 }
 0x2b3   :  { %v402_v61 = vpop.f32.mrf.mxu3  ;;  %v309_v62 = vpop.xlane.xlu0 %308 }
 0x2b4   :  { %v313_v4 = vsub.f32 %v284_v48, %v309_v62 }
 0x2b5   :  { %v431_v63 = vpop.f32.mrf.mxu0  ;;  %v312_v0 = vpop.xlane.xlu2 %311 }
 0x2b6   :  { %v314_v3 = vsub.f32 %v303_v50, %v312_v0  ;;  %v315_v6 = vmul.f32 1.442695, %v313_v4  ;;  %v554_v4 = vld [vmem:[#allocation7 + $0x5] ss:$0 sm:$0xff] }
 0x2b8   :  { %v317_v5 = vmul.f32 1.442695, %v314_v3 }
 0x2ba   :  { %1710 = vpow2.f32 %v317_v5 }
 0x2bb   :  { %1712 = vpow2.f32 %v315_v6 }
 0x2c0   :  { %v1711_v7 = vpop.eup %1710 }
 0x2c1   :  { %v322_v8 = vsel %vm306_vm10, %v1711_v7, 0.0  ;;  %v1713_v11 = vpop.eup %1712 }
 0x2c2   :  { %323 = vadd.xlane.f32.xlu2 %v322_v8  ;;  %v319_v13 = vsel %vm306_vm10, %v1713_v11, 0.0 }
 0x2ca   :  { %484 = vrot.lane.b32.xlu1 %v483_v12, %s1938_s2  ;;  %320 = vadd.xlane.f32.xlu2 %v319_v13 }
 0x322   :  { %v435_v14 = vpop.xlane.xlu2 %434 }
 0x323   :  { %v439_v15 = vsub.f32 %v401_v56, %v435_v14  ;;  %v1531_v56 = vld [vmem:[#allocation8 + $0x3c] sm:$0xf] }
 0x324   :  { %v438_v16 = vpop.xlane.xlu1 %437 }
 0x325   :  { %v441_v17 = vmul.f32 1.442695, %v439_v15  ;;  %v440_v18 = vsub.f32 %v430_v58, %v438_v16  ;;  %v1532_v58 = vor.u32 %v1663_v57, %v1531_v56  ;;  %v560_v56 = vld [vmem:[#allocation7 + $0x7] ss:$0 sm:$0xff] }
 0x327   :  { %1714 = vpow2.f32 %v441_v17  ;;  %v443_v19 = vmul.f32 1.442695, %v440_v18  ;;  %524 = vmatpush.bf16.msra.mxu3 %v1532_v58 }
 0x329   :  { %1716 = vpow2.f32 %v443_v19 }
 0x32d   :  { %v1715_v20 = vpop.eup %1714 }
 0x32e   :  { %v445_v21 = vsel %vm306_vm10, %v1715_v20, 0.0 }
 0x32f   :  { %v1717_v22 = vpop.eup %1716  ;;  %446 = vadd.xlane.f32.xlu2 %v445_v21 }
 0x330   :  { %v448_v23 = vsel %vm306_vm10, %v1717_v22, 0.0 }
 0x331   :  { %449 = vadd.xlane.f32.xlu0 %v448_v23 }
 0x335   :  { %v324_v24 = vpop.xlane.xlu2 %323 }
 0x336   :  { %1718 = vrcp.f32 %v324_v24 }
 0x33c   :  { %v1719_v25 = vpop.eup %1718  ;;  %v485_v27 = vpop.permute.xlu1 %484 }
 0x33d   :  { %v328_v28 = vmul.f32 %v1719_v25, %v1711_v7  ;;  %v490_v29 = vsel %vm336_vm9, %v485_v27, 0  ;;  %v321_v30 = vpop.xlane.xlu2 %320  ;;  %v1665_v25 = vld [vmem:[#allocation8 + $0x54] sm:$0xf0] }
 0x33e   :  { %1720 = vrcp.f32 %v321_v30  ;;  %499 = vmatpush.bf16.msra.mxu2 %v490_v29  ;;  %v1541_v30 = vld [vmem:[#allocation8 + $0x10] sm:$0xf] }
 0x33f   :  { %v330_v32 = vpack.c.bf16 %v328_v28, %v328_v28 }
 0x341   :  { %1524 = vmatmul.msk.bf16.vlgmr.msrb.gmra.mxu2 %vm306_vm10, %v330_v32 }
 0x344   :  { %v1721_v34 = vpop.eup %1720 }
 0x345   :  { %v327_v35 = vmul.f32 %v1721_v34, %v1713_v11  ;;  %460 = vrot.lane.b32.xlu0 %v459_v33, %s1938_s2  ;;  %v1542_v33 = vor.u32 %v1664_v31, %v1541_v30 }
 0x347   :  { %v329_v36 = vpack.c.bf16 %v327_v35, %v327_v35 }
 0x349   :  { %1523 = vmatmul.msk.bf16.vlgmr.msrb.gmra.mxu1 %vm306_vm10, %v329_v36 }
 0x3a2   :  { %v447_v41 = vpop.xlane.xlu2 %446 }
 0x3a4   :  { %v450_v37 = vpop.xlane.xlu0 %449 }
 0x3a5   :  { %1722 = vrcp.f32 %v450_v37 }
 0x3a6   :  { %1724 = vrcp.f32 %v447_v41 }
 0x3ab   :  { %v1723_v42 = vpop.eup %1722 }
 0x3ac   :  { %v454_v26 = vmul.f32 %v1723_v42, %v1717_v22  ;;  %v1725_v44 = vpop.eup %1724 }
 0x3ad   :  { %v453_v47 = vmul.f32 %v1725_v44, %v1715_v20 }
 0x3ae   :  { %v456_v43 = vpack.c.bf16 %v454_v26, %v454_v26 }
 0x3af   :  { %v455_v50 = vpack.c.bf16 %v453_v47, %v453_v47 }
 0x3b0   :  { %1528 = vmatmul.msk.bf16.vlgmr.msra.gmra.mxu2 %vm306_vm10, %v456_v43 }
 0x3b7   :  { %v461_v48 = vpop.permute.xlu0 %460 }
 0x3b8   :  { %v466_v49 = vsel %vm336_vm9, %v461_v48, 0 }
 0x3b9   :  { %475 = vmatpush.bf16.msra.mxu1 %v466_v49 }
 0x3bc   :  { %1527 = vmatmul.msk.bf16.vlgmr.msra.gmra.mxu1 %vm306_vm10, %v455_v50 }
 0x3c4   :  { %v368_v51 = vpop.f32.mrf.mxu2 }
 0x3c6   :  { %v349_v52 = vpop.f32.mrf.mxu1 }
 0x3c7   :  { %v374_v53 = vpack.c.bf16 %v368_v51, %v349_v52  ;;  %v559_v51 = vld [vmem:[#allocation7 + $0x6] ss:$0 sm:$0xff] }
 0x3c9   :  { %1538 = vmatmul.msk.bf16.vlgmr.msrb.gmra.mxu0 %vm267_vm8, %v374_v53 }
 0x3cc   :  { %v370_v54 = vpop.f32.mrf.mxu2 }
 0x3ce   :  { %v351_v55 = vpop.f32.mrf.mxu1 }
 0x433   :  { %v501_v59 = vpop.f32.mrf.mxu2 }
 0x439   :  { %v477_v60 = vpop.f32.mrf.mxu1 }
 0x43a   :  { %v507_v61 = vpack.c.bf16 %v501_v59, %v477_v60 }
 0x43b   :  { %v503_v62 = vpop.f32.mrf.mxu2 }
 0x43c   :  { %1533 = vmatmul.msk.bf16.vlgmr.msra.gmra.mxu3 %vm267_vm8, %v507_v61  ;;  %v1562_v61 = vld [vmem:[#allocation8 + $0xa4] sm:$0xf]  ;;  %v1669_v62 = vld [vmem:[#allocation8 + $0xb8] sm:$0xf0] }
 0x441   :  { %v479_v63 = vpop.f32.mrf.mxu1 }
 0x442   :  { %v1563_v63 = vor.u32 %v1669_v62, %v1562_v61  ;;  %v1675_v61 = vld [vmem:[#allocation8 + $0x10c] sm:$0xf0] }
 0x444   :  { %704 = vmatpush.bf16.msrb.mxu2 %v1563_v63 }
 0x446   :  { %v549_v0 = vpop.f32.mrf.mxu0 }
 0x44e   :  { %v551_v9 = vpop.f32.mrf.mxu0 }
 0x4bf   :  { %v526_v3 = vpop.f32.mrf.mxu3 }
 0x4c0   :  { %v550_v5 = vadd.f32 %v549_v0, %v526_v3  ;;  %v1558_v0 = vld [vmem:[#allocation8 + $0x74] sm:$0xf]  ;;  %v1668_v3 = vld [vmem:[#allocation8 + $0x88] sm:$0xf0] }
 0x4c2   :  { %v555_v6 = vadd.f32 %v554_v4, %v550_v5  ;;  %v1554_v5 = vld [vmem:[#allocation8 + $0x44] sm:$0xf] }
 0x4c4   :  { %v557_v7 = vadd.f32 %v555_v6, %v2001_v1  ;;  %v1667_v6 = vld [vmem:[#allocation8 + $0x58] sm:$0xf0] }
 0x4c6   :  { %v561_v8 = vsel %vm112_vm0, %v557_v7, 0.0 }
 0x4c7   :  { %562 = vadd.xlane.f32.xlu2 %v561_v8  ;;  %v528_v11 = vpop.f32.mrf.mxu3  ;;  %v614_v8 = vld [vmem:[#allocation7 + $0x18] ss:$0 sm:$0xff] }
 0x4c8   :  { %v552_v12 = vadd.f32 %v551_v9, %v528_v11  ;;  %v1550_v9 = vld [vmem:[#allocation8 + $0x14] sm:$0xf]  ;;  %v1666_v11 = vld [vmem:[#allocation8 + $0x28] sm:$0xf0] }
 0x4ca   :  { %v556_v13 = vadd.f32 %v554_v4, %v552_v12  ;;  %v1559_v4 = vor.u32 %v1668_v3, %v1558_v0 }
 0x4cc   :  { %v558_v14 = vadd.f32 %v556_v13, %v2003_v2  ;;  %v1545_v2 = vld [vmem:[#allocation8 + $0x40] sm:$0xf]  ;;  %705 = vmatpush.bf16.msrb.mxu2 %v1559_v4  ;;  %v1551_v13 = vor.u32 %v1666_v11, %v1550_v9  ;;  %v1569_v9 = vld [vmem:[#allocation8 + $0xd8] sm:$0xf0]  ;;  %v1575_v11 = vld [vmem:[#allocation8 + $0xc8] sm:$0xf] }
 0x4cd   :  { %v1546_v27 = vor.u32 %v1665_v25, %v1545_v2  ;;  %v1567_v4 = vld [vmem:[#allocation8 + $0xc0] sm:$0xf] }
 0x4ce   :  { %v564_v15 = vsel %vm112_vm0, %v558_v14, 0.0 }
 0x4cf   :  { %565 = vadd.xlane.f32.xlu2 %v564_v15  ;;  %636 = vmatpush.bf16.msrb.mxu1 %v1546_v27 }
 0x4d3   :  { %637 = vmatpush.bf16.msrb.mxu1 %v1542_v33 }
 0x53a   :  { %v563_v16 = vpop.xlane.xlu2 %562 }
 0x53b   :  { %v567_v17 = vmul.f32 %v563_v16, %v1993_v10 }
 0x53d   :  { %v569_v18 = vsub.f32 %v557_v7, %v567_v17  ;;  %v1555_v7 = vor.u32 %v1667_v6, %v1554_v5  ;;  %v1671_v5 = vld [vmem:[#allocation8 + $0xd4] sm:$0xf0]  ;;  %v1670_v6 = vld [vmem:[#allocation8 + $0xc4] sm:$0xf] }
 0x53f   :  { %v571_v19 = vmul.f32 %v569_v18, %v569_v18  ;;  %706 = vmatpush.bf16.msrb.mxu2 %v1555_v7 }
 0x541   :  { %v573_v20 = vsel %vm112_vm0, %v571_v19, 0.0 }
 0x542   :  { %574 = vadd.xlane.f32.xlu2 %v573_v20  ;;  %v566_v1 = vpop.xlane.xlu2 %565 }
 0x543   :  { %v568_v21 = vmul.f32 %v566_v1, %v1993_v10  ;;  %707 = vmatpush.bf16.msrb.mxu2 %v1551_v13  ;;  %v1672_v13 = vld [vmem:[#allocation8 + $0xdc] sm:$0xf0] }
 0x545   :  { %v570_v22 = vsub.f32 %v558_v14, %v568_v21 }
 0x547   :  { %v572_v23 = vmul.f32 %v570_v22, %v570_v22 }
 0x549   :  { %v576_v24 = vsel %vm112_vm0, %v572_v23, 0.0 }
 0x54a   :  { %577 = vadd.xlane.f32.xlu0 %v576_v24 }
 0x5b5   :  { %v575_v28 = vpop.xlane.xlu2 %574 }
 0x5b6   :  { %v579_v29 = vmul.f32 %v575_v28, %v1993_v10 }
 0x5b8   :  { %v581_v32 = vadd.f32 1e-05, %v579_v29 }
 0x5ba   :  { %1726 = vrsqrt.f32 %v581_v32  ;;  %vm589_vm12 = vweird.f32 %v581_v32 }
 0x5bd   :  { %v578_v34 = vpop.xlane.xlu0 %577 }
 0x5be   :  { %v580_v35 = vmul.f32 %v578_v34, %v1993_v10 }
 0x5c0   :  { %v1727_v36 = vpop.eup %1726  ;;  %v582_v37 = vadd.f32 1e-05, %v580_v35  ;;  %v671_v35 = vld [vmem:[#allocation7 + $0x19] ss:$0 sm:$0xff] }
 0x5c1   :  { %v584_v38 = vmul.f32 %v1727_v36, %v581_v32  ;;  %vm590_vm11 = vweird.f32 %v1727_v36 }
 0x5c2   :  { %1728 = vrsqrt.f32 %v582_v37  ;;  %vm591_vm13 = vmor %vm589_vm12, %vm590_vm11  ;;  %vm599_vm15 = vweird.f32 %v582_v37 }
 0x5c3   :  { %v585_v39 = vmul.f32 %v1727_v36, %v584_v38 }
 0x5c5   :  { %v586_v40 = vmul.f32 0.5, %v585_v39 }
 0x5c7   :  { %v587_v41 = vsub.f32 1.5, %v586_v40 }
 0x5c8   :  { %v1729_v42 = vpop.eup %1728 }
 0x5c9   :  { %v588_v26 = vmul.f32 %v1727_v36, %v587_v41  ;;  %v594_v43 = vmul.f32 %v1729_v42, %v582_v37  ;;  %vm600_vm14 = vweird.f32 %v1729_v42 }
 0x5ca   :  { %vm601_vm1 = vmor %vm599_vm15, %vm600_vm14 }
 0x5cb   :  { %v595_v44 = vmul.f32 %v1729_v42, %v594_v43  ;;  %v592_v47 = vsel %vm591_vm13, %v1727_v36, %v588_v26 }
 0x5cc   :  { %v603_v50 = vmul.f32 %v592_v47, %v569_v18 }
 0x5cd   :  { %v596_v48 = vmul.f32 0.5, %v595_v44 }
 0x5ce   :  { %v605_v54 = vmul.f32 %v603_v50, %v559_v51 }
 0x5cf   :  { %v597_v49 = vsub.f32 1.5, %v596_v48 }
 0x5d0   :  { %v607_v58 = vadd.f32 %v605_v54, %v560_v56 }
 0x5d1   :  { %v598_v52 = vmul.f32 %v1729_v42, %v597_v49 }
 0x5d3   :  { %v602_v53 = vsel %vm601_vm1, %v1729_v42, %v598_v52 }
 0x5d4   :  { %v604_v55 = vmul.f32 %v602_v53, %v570_v22 }
 0x5d6   :  { %v606_v57 = vmul.f32 %v604_v55, %v559_v51  ;;  %v1579_v55 = vld [vmem:[#allocation8 + $0xf0] sm:$0xf] }
 0x5d8   :  { %v608_v59 = vadd.f32 %v606_v57, %v560_v56  ;;  %v1674_v56 = vld [vmem:[#allocation8 + $0x104] sm:$0xf0]  ;;  %v1673_v57 = vld [vmem:[#allocation8 + $0xf4] sm:$0xf] }
 0x5da   :  { %v613_v60 = vpack.c.bf16 %v608_v59, %v607_v58 }
 0x5dc   :  { %1547 = vmatmul.msk.bf16.vlgmr.msrb.gmra.mxu1 %vm112_vm0, %v613_v60  ;;  %v1587_v60 = vld [vmem:[#allocation8 + $0xf8] sm:$0xf] }
 0x5dd   :  { %v1588_v0 = vor.u32 %v1675_v61, %v1587_v60 }
 0x5df   :  { %854 = vmatpush.bf16.msra.mxu1 %v1588_v0 }
 0x659   :  { %v639_v12 = vpop.f32.mrf.mxu1 }
 0x65a   :  { %v640_v14 = vadd.f32 %v639_v12, %v614_v8  ;;  %v1572_v12 = vor.u32 %v1670_v6, %v1569_v9 }
 0x65c   :  { %v644_v15 = vmul.f32 %v640_v14, %v640_v14 }
 0x65e   :  { %v646_v16 = vmul.f32 %v644_v15, %v640_v14 }
 0x660   :  { %v648_v17 = vmul.f32 0.044715, %v646_v16 }
 0x661   :  { %v641_v18 = vpop.f32.mrf.mxu1 }
 0x662   :  { %v650_v19 = vadd.f32 %v648_v17, %v640_v14  ;;  %v642_v20 = vadd.f32 %v641_v18, %v614_v8  ;;  %v1568_v8 = vor.u32 %v1671_v5, %v1567_v4 }
 0x664   :  { %v652_v1 = vmul.f32 0.7978846, %v650_v19  ;;  %v645_v21 = vmul.f32 %v642_v20, %v642_v20 }
 0x666   :  { %v647_v22 = vmul.f32 %v645_v21, %v642_v20  ;;  %1730 = vtanh.f32 %v652_v1 }
 0x668   :  { %v649_v23 = vmul.f32 0.044715, %v647_v22 }
 0x66a   :  { %v651_v24 = vadd.f32 %v649_v23, %v642_v20 }
 0x66c   :  { %v653_v2 = vmul.f32 0.7978846, %v651_v24  ;;  %v1731_v25 = vpop.eup %1730 }
 0x66d   :  { %v656_v27 = vadd.f32 1.0, %v1731_v25 }
 0x66e   :  { %1732 = vtanh.f32 %v653_v2 }
 0x66f   :  { %v658_v29 = vmul.f32 0.5, %v656_v27 }
 0x671   :  { %v660_v32 = vmul.f32 %v658_v29, %v640_v14  ;;  %v1576_v14 = vor.u32 %v1672_v13, %v1575_v11 }
 0x673   :  { %855 = vmatpush.bf16.msra.mxu1 %v1576_v14 }
 0x674   :  { %v1733_v28 = vpop.eup %1732 }
 0x675   :  { %v657_v30 = vadd.f32 1.0, %v1733_v28 }
 0x677   :  { %v659_v31 = vmul.f32 0.5, %v657_v30  ;;  %v716_v30 = vld [vmem:[#allocation7 + $0x1a] ss:$0 sm:$0xff] }
 0x679   :  { %v661_v33 = vmul.f32 %v659_v31, %v642_v20 }
 0x67b   :  { %v670_v34 = vpack.c.bf16 %v661_v33, %v660_v32 }
 0x67d   :  { %1564 = vmatmul.msk.bf16.vlgmr.msrb.gmra.mxu2 %vm696_vm2, %v670_v34 }
 0x700   :  { %v709_v36 = vpop.f32.mrf.mxu2 }
 0x701   :  { %v710_v37 = vadd.f32 %v709_v36, %v671_v35 }
 0x703   :  { %v714_v38 = vadd.f32 %v710_v37, %v607_v58  ;;  %v1580_v58 = vor.u32 %v1674_v56, %v1579_v55 }
 0x705   :  { %v718_v39 = vsel %vm112_vm0, %v714_v38, 0.0  ;;  %826 = vmatpush.bf16.msrb.mxu3 %v1580_v58 }
 0x706   :  { %719 = vadd.xlane.f32.xlu1 %v718_v39 }
 0x708   :  { %v711_v40 = vpop.f32.mrf.mxu2 }
 0x709   :  { %v712_v41 = vadd.f32 %v711_v40, %v671_v35  ;;  %827 = vmatpush.bf16.msrb.mxu3 %v1568_v8  ;;  %v717_v35 = vld [vmem:[#allocation7 + $0x1b] ss:$0 sm:$0xff]  ;;  %v777_v40 = vld [vmem:[#allocation7 + $0x1c] ss:$8 sm:$0x7] }
 0x70b   :  { %v715_v42 = vadd.f32 %v712_v41, %v608_v59  ;;  %v1581_v59 = vld [vmem:[#allocation8 + $0x108] sm:$0xf0]  ;;  %v780_v41 = vperm.slane %v777_v40, 1 }
 0x70c   :  { %v1584_v63 = vor.u32 %v1673_v57, %v1581_v59 }
 0x70d   :  { %v721_v26 = vsel %vm112_vm0, %v715_v42, 0.0 }
 0x70e   :  { %722 = vadd.xlane.f32.xlu2 %v721_v26  ;;  %840 = vmatpush.bf16.msra.mxu0 %v1584_v63 }
 0x712   :  { %841 = vmatpush.bf16.msra.mxu0 %v1572_v12 }
 0x779   :  { %v720_v43 = vpop.xlane.xlu1 %719 }
 0x77a   :  { %v724_v44 = vmul.f32 %v720_v43, %v1993_v10 }
 0x77c   :  { %v726_v47 = vsub.f32 %v714_v38, %v724_v44 }
 0x77e   :  { %v728_v48 = vmul.f32 %v726_v47, %v726_v47 }
 0x780   :  { %v730_v49 = vsel %vm112_vm0, %v728_v48, 0.0 }
 0x781   :  { %v723_v50 = vpop.xlane.xlu2 %722  ;;  %731 = vadd.xlane.f32.xlu2 %v730_v49  ;;  %v779_v49 = vperm.slane %v777_v40, 0 }
 0x782   :  { %v725_v51 = vmul.f32 %v723_v50, %v1993_v10 }
 0x784   :  { %v727_v52 = vsub.f32 %v715_v42, %v725_v51  ;;  %v781_v42 = vperm.slane %v777_v40, 2 }
 0x786   :  { %v729_v53 = vmul.f32 %v727_v52, %v727_v52 }
 0x788   :  { %v733_v54 = vsel %vm112_vm0, %v729_v53, 0.0 }
 0x789   :  { %734 = vadd.xlane.f32.xlu2 %v733_v54 }
 0x7f4   :  { %v732_v62 = vpop.xlane.xlu2 %731 }
 0x7f5   :  { %v736_v3 = vmul.f32 %v732_v62, %v1993_v10 }
 0x7f7   :  { %v738_v7 = vadd.f32 1e-05, %v736_v3 }
 0x7f9   :  { %1734 = vrsqrt.f32 %v738_v7  ;;  %vm746_vm4 = vweird.f32 %v738_v7 }
 0x7fc   :  { %v735_v15 = vpop.xlane.xlu2 %734 }
 0x7fd   :  { %v737_v16 = vmul.f32 %v735_v15, %v1993_v10 }
 0x7ff   :  { %v1735_v17 = vpop.eup %1734  ;;  %v739_v18 = vadd.f32 1e-05, %v737_v16 }
 0x800   :  { %v741_v19 = vmul.f32 %v1735_v17, %v738_v7  ;;  %vm747_vm3 = vweird.f32 %v1735_v17 }
 0x801   :  { %1736 = vrsqrt.f32 %v739_v18  ;;  %vm748_vm5 = vmor %vm746_vm4, %vm747_vm3  ;;  %vm756_vm7 = vweird.f32 %v739_v18 }
 0x802   :  { %v742_v20 = vmul.f32 %v1735_v17, %v741_v19 }
 0x804   :  { %v743_v1 = vmul.f32 0.5, %v742_v20 }
 0x806   :  { %v744_v21 = vsub.f32 1.5, %v743_v1 }
 0x807   :  { %v1737_v22 = vpop.eup %1736 }
 0x808   :  { %v745_v23 = vmul.f32 %v1735_v17, %v744_v21  ;;  %v751_v24 = vmul.f32 %v1737_v22, %v739_v18  ;;  %vm757_vm6 = vweird.f32 %v1737_v22 }
 0x809   :  { %vm758_vm11 = vmor %vm756_vm7, %vm757_vm6 }
 0x80a   :  { %v752_v2 = vmul.f32 %v1737_v22, %v751_v24  ;;  %v749_v25 = vsel %vm748_vm5, %v1735_v17, %v745_v23 }
 0x80b   :  { %v760_v29 = vmul.f32 %v749_v25, %v726_v47 }
 0x80c   :  { %v753_v27 = vmul.f32 0.5, %v752_v2 }
 0x80d   :  { %v762_v33 = vmul.f32 %v760_v29, %v716_v30 }
 0x80e   :  { %v754_v28 = vsub.f32 1.5, %v753_v27 }
 0x80f   :  { %v2074_v37 = vadd.f32 %v762_v33, %v717_v35 }
 0x810   :  { %v755_v31 = vmul.f32 %v1737_v22, %v754_v28 }
 0x812   :  { %v759_v32 = vsel %vm758_vm11, %v1737_v22, %v755_v31 }
 0x813   :  { %v761_v34 = vmul.f32 %v759_v32, %v727_v52 }
 0x815   :  { %v763_v36 = vmul.f32 %v761_v34, %v716_v30 }
 0x817   :  { %v2076_v38 = vadd.f32 %v763_v36, %v717_v35 }
 0x819   :  { %v775_v39 = vpack.c.bf16 %v2076_v38, %v2074_v37 }
 0x81b   :  { %1589 = vmatmul.msk.bf16.vlgmr.msrb.gmra.mxu3 %vm112_vm0, %v775_v39  ;;  %1590 = vmatmul.msk.bf16.vlgmr.msra.gmra.mxu0 %vm112_vm0, %v775_v39 }
 0x81c   :  { %1591 = vmatmul.msk.bf16.vlgmr.msra.gmra.mxu1 %vm112_vm0, %v775_v39 }
 0x898   :  { %v843_v26 = vpop.f32.mrf.mxu0 }
 0x899   :  { %v844_v43 = vadd.f32 %v843_v26, %v780_v41  ;;  %v857_v44 = vpop.f32.mrf.mxu1 }
 0x89a   :  { %v858_v47 = vadd.f32 %v857_v44, %v781_v42 }
 0x89b   :  { %v864_v48 = vpack.c.bf16 %v844_v43, %v844_v43 }
 0x89c   :  { %v2083_v50 = vpack.c.bf16 %v858_v47, %v858_v47 }
 0x89d   :  { %v870_v51 = vsel %vm267_vm8, %v864_v48, 0  ;;  %v977_v52 = vunpack.c.l.b16 %v864_v48 }
 0x89e   :  { %v934_v53 = vsel %vm336_vm9, %v2083_v50, 0  ;;  %v829_v54 = vpop.f32.mrf.mxu3  ;;  %879 = vmatpush.bf16.xpose.msra.mxu2 %v870_v51  ;;  %v1054_v47 = vunpack.c.l.b16 %v2083_v50 }
 0x89f   :  { %v978_v55 = vpack.c.b16 %v977_v52, %v977_v52  ;;  %v830_v56 = vadd.f32 %v829_v54, %v779_v49  ;;  %943 = vmatpush.bf16.msrb.mxu0 %v934_v53 }
 0x8a0   :  { %v845_v57 = vpop.f32.mrf.mxu0  ;;  %v1055_v48 = vpack.c.b16 %v1054_v47, %v1054_v47 }
 0x8a1   :  { %v862_v58 = vpack.c.bf16 %v830_v56, %v830_v56  ;;  %v846_v59 = vadd.f32 %v845_v57, %v780_v41  ;;  %v859_v60 = vpop.f32.mrf.mxu1  ;;  %979 = vrot.lane.b32.xlu2 %v978_v55, %s1938_s2 }
 0x8a2   :  { %v860_v61 = vadd.f32 %v859_v60, %v781_v42 }
 0x8a3   :  { %v972_v62 = vunpack.c.l.b16 %v862_v58  ;;  %v865_v63 = vpack.c.bf16 %v846_v59, %v846_v59 }
 0x8a4   :  { %v2089_v0 = vpack.c.bf16 %v860_v61, %v860_v61 }
 0x8a5   :  { %v973_v3 = vpack.c.b16 %v972_v62, %v972_v62  ;;  %v889_v4 = vsel %vm267_vm8, %v865_v63, 0  ;;  %v1006_v5 = vunpack.c.l.b16 %v865_v63  ;;  %1592 = vmatmul.msk.bf16.vlgmr.msra.gmra.mxu2 %vm267_vm8, %v862_v58 }
 0x8a6   :  { %v953_v6 = vsel %vm336_vm9, %v2089_v0, 0  ;;  %v831_v7 = vpop.f32.mrf.mxu3  ;;  %898 = vmatpush.bf16.xpose.msra.mxu3 %v889_v4 }
 0x8a7   :  { %v1007_v8 = vpack.c.b16 %v1006_v5, %v1006_v5  ;;  %v832_v9 = vadd.f32 %v831_v7, %v779_v49  ;;  %962 = vmatpush.bf16.msrb.mxu1 %v953_v6  ;;  %974 = vrot.lane.b32.xlu1 %v973_v3, %s1938_s2  ;;  %v1078_v3 = vunpack.c.l.b16 %v2089_v0 }
 0x8a9   :  { %v863_v11 = vpack.c.bf16 %v832_v9, %v832_v9  ;;  %1008 = vrot.lane.b32.xlu0 %v1007_v8, %s1938_s2  ;;  %v1079_v6 = vpack.c.b16 %v1078_v3, %v1078_v3  ;;  %v1607_v9 = vld [vmem:[#allocation8 + $0xcc] sm:$0xf] }
 0x8ab   :  { %v1001_v12 = vunpack.c.l.b16 %v863_v11 }
 0x8ad   :  { %v1002_v13 = vpack.c.b16 %v1001_v12, %v1001_v12  ;;  %1593 = vmatmul.msk.bf16.vlgmr.msra.gmra.mxu3 %vm267_vm8, %v863_v11  ;;  %v1676_v11 = vld [vmem:[#allocation8 + $0xe0] sm:$0xf0] }
 0x8ae   :  { %v1608_v12 = vor.u32 %v1676_v11, %v1607_v9 }
 0x8af   :  { %1003 = vrot.lane.b32.xlu2 %v1002_v13, %s1938_s2 }
 0x8fb   :  { %v980_v14 = vpop.permute.xlu2 %979 }
 0x8fc   :  { %v985_v15 = vsel %vm267_vm8, %v980_v14, 0 }
 0x8fd   :  { %994 = vmatpush.bf16.xpose.msrb.mxu2 %v985_v15 }
 0x909   :  { %v1004_v19 = vpop.permute.xlu2 %1003 }
 0x919   :  { %v975_v16 = vpop.permute.xlu1 %974 }
 0x91a   :  { %1596 = vmatmul.msk.bf16.vlgmr.msrb.gmra.mxu2 %vm267_vm8, %v975_v16 }
 0x91b   :  { %v1009_v17 = vpop.permute.xlu0 %1008 }
 0x91c   :  { %v1014_v18 = vsel %vm267_vm8, %v1009_v17, 0 }
 0x91d   :  { %1023 = vmatpush.bf16.xpose.msrb.mxu3 %v1014_v18 }
 0x924   :  { %1597 = vmatmul.msk.bf16.vlgmr.msrb.gmra.mxu3 %vm267_vm8, %v1004_v19 }
 0x925   :  { %1143 = vmatpush.bf16.msra.mxu3 %v1608_v12 }
 0x928   :  { %v881_v20 = vpop.f32.mrf.mxu2 }
 0x929   :  { %v882_v1 = vadd.f32 %v2027_v45, %v881_v20 }
 0x92b   :  { %v904_v21 = vsel %vm306_vm10, %v882_v1, -inf }
 0x92c   :  { %905 = vmax.xlane.f32.xlu0 %v904_v21 }
 0x930   :  { %v883_v22 = vpop.f32.mrf.mxu2  ;;  %v900_v23 = vpop.f32.mrf.mxu3 }
 0x931   :  { %v901_v24 = vadd.f32 %v2029_v46, %v900_v23 }
 0x933   :  { %v907_v2 = vsel %vm306_vm10, %v901_v24, -inf }
 0x934   :  { %908 = vmax.xlane.f32.xlu2 %v907_v2 }
 0x938   :  { %v902_v25 = vpop.f32.mrf.mxu3 }
 0x939   :  { %v1602_v25 = vld [vmem:[#allocation8 + $0xfc] sm:$0xf] }
 0x99d   :  { %v996_v27 = vpop.f32.mrf.mxu2 }
 0x99e   :  { %v997_v28 = vadd.f32 %v2027_v45, %v996_v27  ;;  %v1677_v27 = vld [vmem:[#allocation8 + $0x110] sm:$0xf0] }
 0x99f   :  { %v906_v29 = vpop.xlane.xlu0 %905 }
 0x9a0   :  { %v910_v30 = vsub.f32 %v882_v1, %v906_v29  ;;  %v1029_v31 = vsel %vm306_vm10, %v997_v28, -inf }
 0x9a1   :  { %1030 = vmax.xlane.f32.xlu1 %v1029_v31 }
 0x9a2   :  { %v912_v32 = vmul.f32 1.442695, %v910_v30 }
 0x9a4   :  { %1738 = vpow2.f32 %v912_v32 }
 0x9a5   :  { %v998_v33 = vpop.f32.mrf.mxu2 }
 0x9a7   :  { %v1025_v34 = vpop.f32.mrf.mxu3  ;;  %v909_v35 = vpop.xlane.xlu2 %908 }
 0x9a8   :  { %v1026_v36 = vadd.f32 %v2029_v46, %v1025_v34  ;;  %v911_v39 = vsub.f32 %v901_v24, %v909_v35 }
 0x9aa   :  { %v1739_v40 = vpop.eup %1738  ;;  %v914_v41 = vmul.f32 1.442695, %v911_v39  ;;  %v1032_v42 = vsel %vm306_vm10, %v1026_v36, -inf }
 0x9ab   :  { %1033 = vmax.xlane.f32.xlu0 %v1032_v42  ;;  %v916_v45 = vsel %vm306_vm10, %v1739_v40, 0.0 }
 0x9ac   :  { %1740 = vpow2.f32 %v914_v41  ;;  %917 = vadd.xlane.f32.xlu2 %v916_v45 }
 0x9af   :  { %v1027_v26 = vpop.f32.mrf.mxu3 }
 0x9b2   :  { %v1741_v43 = vpop.eup %1740 }
 0x9b3   :  { %v919_v44 = vsel %vm306_vm10, %v1741_v43, 0.0 }
 0x9b4   :  { %920 = vadd.xlane.f32.xlu1 %v919_v44 }
 0x9cd   :  { %1056 = vrot.lane.b32.xlu1 %v1055_v48, %s1938_s2 }
 0xa14   :  { %v1031_v46 = vpop.xlane.xlu1 %1030 }
 0xa15   :  { %v1035_v49 = vsub.f32 %v997_v28, %v1031_v46  ;;  %v1603_v28 = vor.u32 %v1677_v27, %v1602_v25 }
 0xa17   :  { %v1037_v51 = vmul.f32 1.442695, %v1035_v49  ;;  %1120 = vmatpush.bf16.msra.mxu2 %v1603_v28 }
 0xa19   :  { %1742 = vpow2.f32 %v1037_v51 }
 0xa1e   :  { %v1034_v52 = vpop.xlane.xlu0 %1033 }
 0xa1f   :  { %v1743_v53 = vpop.eup %1742  ;;  %v1036_v54 = vsub.f32 %v1026_v36, %v1034_v52  ;;  %v918_v55 = vpop.xlane.xlu2 %917  ;;  %v1150_v36 = vld [vmem:[#allocation7 + $0x1d] ss:$0 sm:$0xff] }
 0xa20   :  { %1744 = vrcp.f32 %v918_v55  ;;  %v1041_v56 = vsel %vm306_vm10, %v1743_v53, 0.0 }
 0xa21   :  { %v1039_v57 = vmul.f32 1.442695, %v1036_v54  ;;  %1042 = vadd.xlane.f32.xlu0 %v1041_v56 }
 0xa23   :  { %1746 = vpow2.f32 %v1039_v57 }
 0xa26   :  { %v1745_v58 = vpop.eup %1744 }
 0xa27   :  { %v924_v59 = vmul.f32 %v1745_v58, %v1739_v40  ;;  %v921_v50 = vpop.xlane.xlu1 %920  ;;  %v1679_v58 = vld [vmem:[#allocation8 + $0x114] sm:$0xf0] }
 0xa28   :  { %1748 = vrcp.f32 %v921_v50 }
 0xa29   :  { %v1747_v60 = vpop.eup %1746  ;;  %v926_v61 = vpack.c.bf16 %v924_v59, %v924_v59 }
 0xa2a   :  { %v1044_v62 = vsel %vm306_vm10, %v1747_v60, 0.0 }
 0xa2b   :  { %1594 = vmatmul.msk.bf16.vlgmr.msrb.gmra.mxu0 %vm306_vm10, %v926_v61  ;;  %1045 = vadd.xlane.f32.xlu2 %v1044_v62  ;;  %v1612_v61 = vld [vmem:[#allocation8 + $0xd0] sm:$0xf]  ;;  %v1678_v62 = vld [vmem:[#allocation8 + $0xe4] sm:$0xf0] }
 0xa2c   :  { %v1613_v3 = vor.u32 %v1678_v62, %v1612_v61 }
 0xa2e   :  { %v1749_v63 = vpop.eup %1748 }
 0xa2f   :  { %v925_v4 = vmul.f32 %v1749_v63, %v1741_v43 }
 0xa31   :  { %v927_v5 = vpack.c.bf16 %v925_v4, %v925_v4 }
 0xa33   :  { %1595 = vmatmul.msk.bf16.vlgmr.msrb.gmra.mxu1 %vm306_vm10, %v927_v5 }
 0xa35   :  { %1080 = vrot.lane.b32.xlu0 %v1079_v6, %s1938_s2 }
 0xa3f   :  { %v1057_v7 = vpop.permute.xlu1 %1056 }
 0xa40   :  { %v1062_v8 = vsel %vm336_vm9, %v1057_v7, 0 }
 0xa41   :  { %1071 = vmatpush.bf16.msra.mxu0 %v1062_v8 }
 0xa94   :  { %v1043_v13 = vpop.xlane.xlu0 %1042 }
 0xa95   :  { %1750 = vrcp.f32 %v1043_v13 }
 0xa9b   :  { %v1751_v14 = vpop.eup %1750 }
 0xa9c   :  { %v1049_v15 = vmul.f32 %v1751_v14, %v1743_v53 }
 0xa9e   :  { %v1051_v0 = vpack.c.bf16 %v1049_v15, %v1049_v15  ;;  %v1046_v16 = vpop.xlane.xlu2 %1045 }
 0xa9f   :  { %1752 = vrcp.f32 %v1046_v16 }
 0xaa0   :  { %1598 = vmatmul.msk.bf16.vlgmr.msra.gmra.mxu0 %vm306_vm10, %v1051_v0 }
 0xaa5   :  { %v1753_v17 = vpop.eup %1752 }
 0xaa6   :  { %v1050_v18 = vmul.f32 %v1753_v17, %v1747_v60 }
 0xaa7   :  { %v1081_v19 = vpop.permute.xlu0 %1080 }
 0xaa8   :  { %v1086_v20 = vsel %vm336_vm9, %v1081_v19, 0  ;;  %v945_v1 = vpop.f32.mrf.mxu0  ;;  %v1052_v21 = vpack.c.bf16 %v1050_v18, %v1050_v18 }
 0xaa9   :  { %1095 = vmatpush.bf16.msra.mxu1 %v1086_v20  ;;  %v1155_v20 = vld [vmem:[#allocation7 + $0x1e] ss:$0 sm:$0xff] }
 0xaac   :  { %1599 = vmatmul.msk.bf16.vlgmr.msra.gmra.mxu1 %vm306_vm10, %v1052_v21 }
 0xab0   :  { %v947_v22 = vpop.f32.mrf.mxu0  ;;  %v964_v23 = vpop.f32.mrf.mxu1 }
 0xab1   :  { %v970_v24 = vpack.c.bf16 %v964_v23, %v945_v1 }
 0xab3   :  { %1609 = vmatmul.msk.bf16.vlgmr.msra.gmra.mxu3 %vm267_vm8, %v970_v24  ;;  %v1156_v24 = vld [vmem:[#allocation7 + $0x1f] ss:$0 sm:$0xff] }
 0xab8   :  { %v966_v2 = vpop.f32.mrf.mxu1 }
 0xb1d   :  { %v1073_v29 = vpop.f32.mrf.mxu0 }
 0xb25   :  { %v1075_v30 = vpop.f32.mrf.mxu0 }
 0xb26   :  { %v1683_v30 = vld [vmem:[#allocation8 + $0x178] sm:$0xf0] }
 0xb29   :  { %v1097_v31 = vpop.f32.mrf.mxu1 }
 0xb2a   :  { %v1103_v32 = vpack.c.bf16 %v1097_v31, %v1073_v29  ;;  %v1633_v29 = vld [vmem:[#allocation8 + $0x164] sm:$0xf] }
 0xb2b   :  { %v1634_v31 = vor.u32 %v1683_v30, %v1633_v29 }
 0xb2c   :  { %1604 = vmatmul.msk.bf16.vlgmr.msra.gmra.mxu2 %vm267_vm8, %v1103_v32  ;;  %v1629_v32 = vld [vmem:[#allocation8 + $0x134] sm:$0xf] }
 0xb2d   :  { %1299 = vmatpush.bf16.msrb.mxu1 %v1634_v31 }
 0xb31   :  { %v1099_v33 = vpop.f32.mrf.mxu1 }
 0xb32   :  { %v1682_v33 = vld [vmem:[#allocation8 + $0x148] sm:$0xf0] }
 0xb36   :  { %v1145_v34 = vpop.f32.mrf.mxu3 }
 0xb3e   :  { %v1147_v45 = vpop.f32.mrf.mxu3 }
 0xbaf   :  { %v1122_v35 = vpop.f32.mrf.mxu2 }
 0xbb0   :  { %v1146_v39 = vadd.f32 %v1145_v34, %v1122_v35  ;;  %v1630_v34 = vor.u32 %v1682_v33, %v1629_v32  ;;  %v1625_v35 = vld [vmem:[#allocation8 + $0x104] sm:$0xf] }
 0xbb2   :  { %v1151_v40 = vadd.f32 %v1150_v36, %v1146_v39  ;;  %1300 = vmatpush.bf16.msrb.mxu1 %v1630_v34 }
 0xbb4   :  { %v1153_v41 = vadd.f32 %v1151_v40, %v2074_v37  ;;  %v1210_v40 = vld [vmem:[#allocation7 + $0x30] ss:$0 sm:$0xff] }
 0xbb6   :  { %v1157_v42 = vsel %vm112_vm0, %v1153_v41, 0.0 }
 0xbb7   :  { %1158 = vadd.xlane.f32.xlu2 %v1157_v42  ;;  %v1124_v26 = vpop.f32.mrf.mxu2  ;;  %v1680_v42 = vld [vmem:[#allocation8 + $0xe8] sm:$0xf0] }
 0xbb8   :  { %v1148_v43 = vadd.f32 %v1147_v45, %v1124_v26 }
 0xbba   :  { %v1152_v44 = vadd.f32 %v1150_v36, %v1148_v43  ;;  %v1681_v36 = vld [vmem:[#allocation8 + $0x118] sm:$0xf0] }
 0xbbb   :  { %v1626_v39 = vor.u32 %v1681_v36, %v1625_v35 }
 0xbbc   :  { %v1154_v47 = vadd.f32 %v1152_v44, %v2076_v38  ;;  %v1616_v38 = vld [vmem:[#allocation8 + $0x100] sm:$0xf] }
 0xbbd   :  { %v1617_v59 = vor.u32 %v1679_v58, %v1616_v38  ;;  %1301 = vmatpush.bf16.msrb.mxu1 %v1626_v39 }
 0xbbe   :  { %v1160_v48 = vsel %vm112_vm0, %v1154_v47, 0.0 }
 0xbbf   :  { %1161 = vadd.xlane.f32.xlu2 %v1160_v48  ;;  %1232 = vmatpush.bf16.msrb.mxu0 %v1617_v59 }
 0xbc3   :  { %1233 = vmatpush.bf16.msrb.mxu0 %v1613_v3  ;;  %v1267_v3 = vld [vmem:[#allocation7 + $0x31] ss:$0 sm:$0xff] }
 0xc2a   :  { %v1159_v46 = vpop.xlane.xlu2 %1158 }
 0xc2b   :  { %v1163_v49 = vmul.f32 %v1159_v46, %v1993_v10 }
 0xc2d   :  { %v1165_v51 = vsub.f32 %v1153_v41, %v1163_v49  ;;  %v1621_v41 = vld [vmem:[#allocation8 + $0xd4] sm:$0xf] }
 0xc2e   :  { %v1622_v26 = vor.u32 %v1680_v42, %v1621_v41 }
 0xc2f   :  { %v1167_v52 = vmul.f32 %v1165_v51, %v1165_v51 }
 0xc30   :  { %1302 = vmatpush.bf16.msrb.mxu1 %v1622_v26 }
 0xc31   :  { %v1169_v53 = vsel %vm112_vm0, %v1167_v52, 0.0 }
 0xc32   :  { %1170 = vadd.xlane.f32.xlu2 %v1169_v53  ;;  %v1162_v37 = vpop.xlane.xlu2 %1161 }
 0xc33   :  { %v1164_v54 = vmul.f32 %v1162_v37, %v1993_v10 }
 0xc35   :  { %v1166_v55 = vsub.f32 %v1154_v47, %v1164_v54 }
 0xc37   :  { %v1168_v56 = vmul.f32 %v1166_v55, %v1166_v55 }
 0xc39   :  { %v1172_v57 = vsel %vm112_vm0, %v1168_v56, 0.0 }
 0xc3a   :  { %1173 = vadd.xlane.f32.xlu0 %v1172_v57 }
 0xca5   :  { %v1171_v50 = vpop.xlane.xlu2 %1170 }
 0xca6   :  { %v1175_v60 = vmul.f32 %v1171_v50, %v1993_v10 }
 0xca8   :  { %v1177_v63 = vadd.f32 1e-05, %v1175_v60 }
 0xcaa   :  { %1754 = vrsqrt.f32 %v1177_v63  ;;  %vm1185_vm9 = vweird.f32 %v1177_v63 }
 0xcad   :  { %v1174_v4 = vpop.xlane.xlu0 %1173 }
 0xcae   :  { %v1176_v5 = vmul.f32 %v1174_v4, %v1993_v10 }
 0xcb0   :  { %v1755_v6 = vpop.eup %1754  ;;  %v1178_v7 = vadd.f32 1e-05, %v1176_v5 }
 0xcb1   :  { %v1180_v8 = vmul.f32 %v1755_v6, %v1177_v63  ;;  %vm1186_vm8 = vweird.f32 %v1755_v6 }
 0xcb2   :  { %1756 = vrsqrt.f32 %v1178_v7  ;;  %vm1187_vm10 = vmor %vm1185_vm9, %vm1186_vm8  ;;  %vm1195_vm13 = vweird.f32 %v1178_v7 }
 0xcb3   :  { %v1181_v9 = vmul.f32 %v1755_v6, %v1180_v8 }
 0xcb5   :  { %v1182_v11 = vmul.f32 0.5, %v1181_v9 }
 0xcb7   :  { %v1183_v12 = vsub.f32 1.5, %v1182_v11 }
 0xcb8   :  { %v1757_v13 = vpop.eup %1756 }
 0xcb9   :  { %v1184_v14 = vmul.f32 %v1755_v6, %v1183_v12  ;;  %v1190_v15 = vmul.f32 %v1757_v13, %v1178_v7  ;;  %vm1196_vm12 = vweird.f32 %v1757_v13 }
 0xcba   :  { %vm1197_vm14 = vmor %vm1195_vm13, %vm1196_vm12 }
 0xcbb   :  { %v1191_v0 = vmul.f32 %v1757_v13, %v1190_v15  ;;  %v1188_v16 = vsel %vm1187_vm10, %v1755_v6, %v1184_v14 }
 0xcbc   :  { %v1199_v19 = vmul.f32 %v1188_v16, %v1165_v51 }
 0xcbd   :  { %v1192_v17 = vmul.f32 0.5, %v1191_v0 }
 0xcbe   :  { %v1201_v22 = vmul.f32 %v1199_v19, %v1155_v20 }
 0xcbf   :  { %v1193_v18 = vsub.f32 1.5, %v1192_v17 }
 0xcc0   :  { %v1203_v25 = vadd.f32 %v1201_v22, %v1156_v24  ;;  %v1685_v22 = vld [vmem:[#allocation10 + $0x14] sm:$0xf0] }
 0xcc1   :  { %v1194_v1 = vmul.f32 %v1757_v13, %v1193_v18 }
 0xcc3   :  { %v1198_v21 = vsel %vm1197_vm14, %v1757_v13, %v1194_v1 }
 0xcc4   :  { %v1200_v23 = vmul.f32 %v1198_v21, %v1166_v55  ;;  %v1642_v21 = vld [vmem:[#allocation10 + $0x10] sm:$0xf] }
 0xcc6   :  { %v1202_v2 = vmul.f32 %v1200_v23, %v1155_v20  ;;  %v1643_v23 = vor.u32 %v1685_v22, %v1642_v21 }
 0xcc8   :  { %v1204_v27 = vadd.f32 %v1202_v2, %v1156_v24  ;;  %1388 = vmatpush.bf16.msrb.mxu2 %v1643_v23 }
 0xcca   :  { %v1209_v28 = vpack.c.bf16 %v1204_v27, %v1203_v25 }
 0xccc   :  { %1618 = vmatmul.msk.bf16.vlgmr.msrb.gmra.mxu0 %vm112_vm0, %v1209_v28 }
 0xd49   :  { %v1235_v45 = vpop.f32.mrf.mxu0 }
 0xd4a   :  { %v1236_v43 = vadd.f32 %v1235_v45, %v1210_v40 }
 0xd4c   :  { %v1240_v44 = vmul.f32 %v1236_v43, %v1236_v43 }
 0xd4e   :  { %v1242_v47 = vmul.f32 %v1240_v44, %v1236_v43 }
 0xd50   :  { %v1244_v48 = vmul.f32 0.044715, %v1242_v47 }
 0xd51   :  { %v1237_v46 = vpop.f32.mrf.mxu0 }
 0xd52   :  { %v1246_v49 = vadd.f32 %v1244_v48, %v1236_v43  ;;  %v1238_v51 = vadd.f32 %v1237_v46, %v1210_v40 }
 0xd54   :  { %v1248_v52 = vmul.f32 0.7978846, %v1246_v49  ;;  %v1241_v53 = vmul.f32 %v1238_v51, %v1238_v51 }
 0xd56   :  { %v1243_v37 = vmul.f32 %v1241_v53, %v1238_v51  ;;  %1758 = vtanh.f32 %v1248_v52  ;;  %v1312_v52 = vld [vmem:[#allocation7 + $0x33] ss:$0 sm:$0xff] }
 0xd58   :  { %v1245_v54 = vmul.f32 0.044715, %v1243_v37 }
 0xd5a   :  { %v1247_v55 = vadd.f32 %v1245_v54, %v1238_v51 }
 0xd5c   :  { %v1249_v56 = vmul.f32 0.7978846, %v1247_v55  ;;  %v1759_v57 = vpop.eup %1758 }
 0xd5d   :  { %v1252_v38 = vadd.f32 1.0, %v1759_v57 }
 0xd5e   :  { %1760 = vtanh.f32 %v1249_v56  ;;  %v1366_v56 = vld [vmem:[#allocation7 + $0x2] ss:$0 sm:$0xff] }
 0xd5f   :  { %v1254_v59 = vmul.f32 0.5, %v1252_v38 }
 0xd61   :  { %v1256_v61 = vmul.f32 %v1254_v59, %v1236_v43  ;;  %v1687_v59 = vld [vmem:[#allocation10 + $0x18] sm:$0xf0] }
 0xd64   :  { %v1761_v58 = vpop.eup %1760 }
 0xd65   :  { %v1253_v50 = vadd.f32 1.0, %v1761_v58  ;;  %v1653_v58 = vld [vmem:[#allocation10 + $0x14] sm:$0xf] }
 0xd67   :  { %v1255_v60 = vmul.f32 0.5, %v1253_v50 }
 0xd69   :  { %v1257_v62 = vmul.f32 %v1255_v60, %v1238_v51  ;;  %v1654_v60 = vor.u32 %v1687_v59, %v1653_v58 }
 0xd6b   :  { %v1266_v63 = vpack.c.bf16 %v1257_v62, %v1256_v61  ;;  %1463 = vmatpush.bf16.msrb.mxu3 %v1654_v60  ;;  %v1649_v61 = vld [vmem:[#allocation10 + $0x4] sm:$0xf]  ;;  %v1686_v62 = vld [vmem:[#allocation10 + $0x8] sm:$0xf0] }
 0xd6d   :  { %1635 = vmatmul.msk.bf16.vlgmr.msrb.gmra.mxu1 %vm696_vm2, %v1266_v63  ;;  %v1650_v63 = vor.u32 %v1686_v62, %v1649_v61 }
 0xd6f   :  { %1464 = vmatpush.bf16.msrb.mxu3 %v1650_v63 }
 0xdea   :  { %v1304_v4 = vpop.f32.mrf.mxu1 }
 0xdeb   :  { %v1305_v5 = vadd.f32 %v1304_v4, %v1267_v3 }
 0xded   :  { %v1309_v6 = vadd.f32 %v1305_v5, %v1203_v25  ;;  %v1638_v25 = vld [vmem:[#allocation10] sm:$0xf] }
 0xdef   :  { %v1313_v7 = vsel %vm112_vm0, %v1309_v6, 0.0 }
 0xdf0   :  { %1314 = vadd.xlane.f32.xlu1 %v1313_v7 }
 0xdf2   :  { %v1306_v8 = vpop.f32.mrf.mxu1 }
 0xdf3   :  { %v1307_v9 = vadd.f32 %v1306_v8, %v1267_v3 }
 0xdf5   :  { %v1310_v11 = vadd.f32 %v1307_v9, %v1204_v27  ;;  %v1684_v27 = vld [vmem:[#allocation10 + $0x4] sm:$0xf0] }
 0xdf6   :  { %v1639_v29 = vor.u32 %v1684_v27, %v1638_v25 }
 0xdf7   :  { %v1316_v12 = vsel %vm112_vm0, %v1310_v11, 0.0 }
 0xdf8   :  { %1317 = vadd.xlane.f32.xlu2 %v1316_v12  ;;  %1389 = vmatpush.bf16.msrb.mxu2 %v1639_v29 }
 0xe63   :  { %v1315_v13 = vpop.xlane.xlu1 %1314 }
 0xe64   :  { %v1319_v14 = vmul.f32 %v1315_v13, %v1993_v10 }
 0xe66   :  { %v1321_v15 = vsub.f32 %v1309_v6, %v1319_v14 }
 0xe68   :  { %v1323_v0 = vmul.f32 %v1321_v15, %v1321_v15 }
 0xe6a   :  { %v1325_v16 = vsel %vm112_vm0, %v1323_v0, 0.0 }
 0xe6b   :  { %v1318_v17 = vpop.xlane.xlu2 %1317  ;;  %1326 = vadd.xlane.f32.xlu2 %v1325_v16 }
 0xe6c   :  { %v1320_v18 = vmul.f32 %v1318_v17, %v1993_v10 }
 0xe6e   :  { %v1322_v19 = vsub.f32 %v1310_v11, %v1320_v18 }
 0xe70   :  { %v1324_v20 = vmul.f32 %v1322_v19, %v1322_v19 }
 0xe72   :  { %v1328_v1 = vsel %vm112_vm0, %v1324_v20, 0.0 }
 0xe73   :  { %1329 = vadd.xlane.f32.xlu2 %v1328_v1 }
 0xede   :  { %v1327_v24 = vpop.xlane.xlu2 %1326 }
 0xedf   :  { %v1331_v2 = vmul.f32 %v1327_v24, %v1993_v10 }
 0xee1   :  { %v1333_v28 = vadd.f32 1e-05, %v1331_v2 }
 0xee3   :  { %1762 = vrsqrt.f32 %v1333_v28  ;;  %vm1341_vm1 = vweird.f32 %v1333_v28 }
 0xee6   :  { %v1330_v30 = vpop.xlane.xlu2 %1329 }
 0xee7   :  { %v1332_v31 = vmul.f32 %v1330_v30, %v1993_v10  ;;  %v1311_v10 = vld [vmem:[#allocation7 + $0x32] ss:$0 sm:$0xff] }
 0xee9   :  { %v1763_v32 = vpop.eup %1762  ;;  %v1334_v33 = vadd.f32 1e-05, %v1332_v31 }
 0xeea   :  { %v1336_v34 = vmul.f32 %v1763_v32, %v1333_v28  ;;  %vm1342_vm15 = vweird.f32 %v1763_v32 }
 0xeeb   :  { %1764 = vrsqrt.f32 %v1334_v33  ;;  %vm1343_vm2 = vmor %vm1341_vm1, %vm1342_vm15  ;;  %vm1351_vm4 = vweird.f32 %v1334_v33 }
 0xeec   :  { %v1337_v35 = vmul.f32 %v1763_v32, %v1336_v34 }
 0xeee   :  { %v1338_v36 = vmul.f32 0.5, %v1337_v35 }
 0xef0   :  { %v1339_v39 = vsub.f32 1.5, %v1338_v36 }
 0xef1   :  { %v1765_v40 = vpop.eup %1764 }
 0xef2   :  { %v1340_v41 = vmul.f32 %v1763_v32, %v1339_v39  ;;  %v1346_v42 = vmul.f32 %v1765_v40, %v1334_v33  ;;  %vm1352_vm3 = vweird.f32 %v1765_v40 }
 0xef3   :  { %vm1353_vm5 = vmor %vm1351_vm4, %vm1352_vm3 }
 0xef4   :  { %v1347_v45 = vmul.f32 %v1765_v40, %v1346_v42  ;;  %v1344_v26 = vsel %vm1343_vm2, %v1763_v32, %v1340_v41  ;;  %v1441_v32 = vld [vmem:[#allocation7 + $0x3] ss:$0 sm:$0xff] }
 0xef5   :  { %v1355_v47 = vmul.f32 %v1344_v26, %v1321_v15 }
 0xef6   :  { %v1348_v43 = vmul.f32 0.5, %v1347_v45 }
 0xef7   :  { %v1357_v49 = vmul.f32 %v1355_v47, %v1311_v10 }
 0xef8   :  { %v1349_v44 = vsub.f32 1.5, %v1348_v43 }
 0xef9   :  { %v1359_v37 = vadd.f32 %v1357_v49, %v1312_v52 }
 0xefa   :  { %v1350_v48 = vmul.f32 %v1765_v40, %v1349_v44 }
 0xefc   :  { %v1354_v46 = vsel %vm1353_vm5, %v1765_v40, %v1350_v48 }
 0xefd   :  { %v1356_v51 = vmul.f32 %v1354_v46, %v1322_v19 }
 0xeff   :  { %v1358_v53 = vmul.f32 %v1356_v51, %v1311_v10 }
 0xf01   :  { %v1360_v54 = vadd.f32 %v1358_v53, %v1312_v52 }
 0xf03   :  { %v1365_v55 = vpack.c.bf16 %v1360_v54, %v1359_v37 }
 0xf05   :  { %1644 = vmatmul.msk.bf16.vlgmr.msrb.gmra.mxu2 %vm112_vm0, %v1365_v55 }
 0xf88   :  { %v1391_v57 = vpop.f32.mrf.mxu2 }
 0xf89   :  { %v1392_v38 = vadd.f32 %v1391_v57, %v1366_v56 }
 0xf8b   :  { %v1645_v50 = vmul.f32 -1.442695, %v1392_v38 }
 0xf8d   :  { %1766 = vpow2.f32 %v1645_v50 }
 0xf90   :  { %v1393_v3 = vpop.f32.mrf.mxu2 }
 0xf91   :  { %v1394_v4 = vadd.f32 %v1393_v3, %v1366_v56 }
 0xf93   :  { %v1767_v5 = vpop.eup %1766  ;;  %v1646_v6 = vmul.f32 -1.442695, %v1394_v4 }
 0xf94   :  { %v1402_v7 = vadd.f32 1.0, %v1767_v5 }
 0xf95   :  { %1768 = vpow2.f32 %v1646_v6 }
 0xf96   :  { %1770 = vrcp.f32 %v1402_v7  ;;  %v1415_v17 = vand.u32 2147483648, %v1402_v7  ;;  %vm1409_vm7 = vweird.f32 %v1402_v7  ;;  %v1413_v18 = vand.u32 2147483647, %v1402_v7 }
 0xf98   :  { %v1416_v23 = vor.u32 1.1754944e-38, %v1415_v17  ;;  %vm1414_vm9 = vcmp.eq.f32.partialorder %v1413_v18, 8.507059e+37 }
 0xf9b   :  { %v1769_v8 = vpop.eup %1768 }
 0xf9c   :  { %v1771_v9 = vpop.eup %1770  ;;  %v1403_v11 = vadd.f32 1.0, %v1769_v8 }
 0xf9d   :  { %v1405_v12 = vmul.f32 %v1771_v9, %v1402_v7  ;;  %vm1410_vm6 = vweird.f32 %v1771_v9 }
 0xf9e   :  { %1772 = vrcp.f32 %v1403_v11  ;;  %vm1411_vm11 = vmor %vm1409_vm7, %vm1410_vm6  ;;  %v1430_v20 = vand.u32 2147483648, %v1403_v11  ;;  %v1428_v22 = vand.u32 2147483647, %v1403_v11  ;;  %vm1424_vm10 = vweird.f32 %v1403_v11 }
 0xf9f   :  { %v1406_v13 = vsub.f32 1.0, %v1405_v12 }
 0xfa0   :  { %v1431_v25 = vor.u32 1.1754944e-38, %v1430_v20  ;;  %vm1429_vm13 = vcmp.eq.f32.partialorder %v1428_v22, 8.507059e+37 }
 0xfa1   :  { %v1407_v14 = vmul.f32 %v1771_v9, %v1406_v13 }
 0xfa3   :  { %v1408_v0 = vadd.f32 %v1771_v9, %v1407_v14 }
 0xfa4   :  { %v1773_v15 = vpop.eup %1772 }
 0xfa5   :  { %v1420_v16 = vmul.f32 %v1773_v15, %v1403_v11  ;;  %v1412_v1 = vsel %vm1411_vm11, %v1771_v9, %v1408_v0  ;;  %vm1425_vm8 = vweird.f32 %v1773_v15 }
 0xfa6   :  { %v1417_v2 = vsel %vm1414_vm9, %v1416_v23, %v1412_v1  ;;  %vm1426_vm12 = vmor %vm1424_vm10, %vm1425_vm8 }
 0xfa7   :  { %v1421_v19 = vsub.f32 1.0, %v1420_v16  ;;  %v1434_v29 = vmul.f32 %v1417_v2, %v1392_v38 }
 0xfa9   :  { %v1422_v21 = vmul.f32 %v1773_v15, %v1421_v19 }
 0xfab   :  { %v1423_v24 = vadd.f32 %v1773_v15, %v1422_v21 }
 0xfad   :  { %v1427_v27 = vsel %vm1426_vm12, %v1773_v15, %v1423_v24 }
 0xfae   :  { %v1432_v28 = vsel %vm1429_vm13, %v1431_v25, %v1427_v27 }
 0xfaf   :  { %v1435_v30 = vmul.f32 %v1432_v28, %v1394_v4 }
 0xfb1   :  { %v1440_v31 = vpack.c.bf16 %v1435_v30, %v1434_v29 }
 0xfb3   :  { %1655 = vmatmul.msk.bf16.vlgmr.msrb.gmra.mxu3 %vm112_vm0, %v1440_v31 }
0x1036   :  { %v1466_v33 = vpop.f32.mrf.mxu3 }
0x1037   :  { %v1467_v34 = vadd.f32 %v1466_v33, %v1441_v32 }
0x1039   :  { %1471 = vst [vmem:[#allocation11] sm:$0xff] %v1467_v34 }
0x103e   :  { %v1468_v35 = vpop.f32.mrf.mxu3 }
0x103f   :  { %v1469_v36 = vadd.f32 %v1468_v35, %v1441_v32 }
0x1041   :  { %1472 = vst [vmem:[#allocation11 + $0x8] sm:$0xff] %v1469_v36 }
0x1042   :  { %1485 = dma.vmem_to_hbm [thread:$0]  %s1478_s21, 256, %s1480_s24, [#allocation4], %s1933_s3, %s1933_s3, %s1934_s14  }
0x1043   :  { %1924 = dma.done.wait [#allocation4], 256  }
0x1044   :  { %1925 = vsyncadd [#allocation4], 4294967040 }
0x1045   :  { %1490 = vsyncpa [#allocation3], 1 }
0x1046   :  { %1491 = vsyncpa [#allocation6], 1 }
0x1047   :  { %1492 = vsyncpa [#allocation9], 1 }
0x1048   :  { %1493 = vsyncpa [#allocation4], 1 }

</bundles_post_ra>
